<compile_context>
chip_gen: v5e
topology: v5e:2x2
jax: 0.10.0
libtpu: 0.0.40
codegen_flags: <defaults>
</compile_context>

<pallas_src>
import math

import jax
import jax.numpy as jnp
from jax.experimental import pallas as pl
from jax.experimental.pallas import tpu as pltpu

# Per-instance sizes (forced by the module's own shape algebra: B == 1, N == D).
N = 16          # sequence length
D_IN = 32       # dim_in
D = 16          # dim_out (must equal N)
HEADS = 1
SCALE = math.sqrt(D // HEADS)          # sqrt(scale_factor) = 4.0
INV_TOTAL_SCALE = 1.0 / (SCALE * N)    # folds "/ sqrt(scale)" and "/ shape[-1]"

# Batching of independent module instances.
GROUP = 8                    # instances per grid step -> 128 sublane rows / step
G_TOTAL = 16                 # total independent instances in the demo

# Row offsets inside the packed weight operand (all multiples of 8 sublanes).
_WQ_OFF = 0
_WK_OFF = D_IN
_WV_OFF = 2 * D_IN
_WO_OFF = 3 * D_IN
_BO_OFF = 3 * D_IN + D
_W_ROWS_RAW = 3 * D_IN + D + 1                     # 113
_W_ROWS = ((_W_ROWS_RAW + 7) // 8) * 8             # padded to 120


def pack_weights(wq_t, wk_t, wv_t, wo_t, bo):
    """One-time host-side weight packing (hoisted off the per-call path).

    Layout (rows):  [Wq^T (32) ; Wk^T (32) ; Wv^T (32) ; Wo^T (16) ; bo (1) ; pad]
    """
    w = jnp.concatenate(
        [wq_t, wk_t, wv_t, wo_t, bo.reshape(1, D)], axis=0)           # (113, 16)
    w = jnp.pad(w, ((0, _W_ROWS - _W_ROWS_RAW), (0, 0)))              # (120, 16)
    return w


def self_attention_kernel(x_ref, w_ref, o_ref):
    x = x_ref[...]                                       # (GROUP*N, D_IN) = (128, 32)

    # Sublane-sliced weight views (offsets are multiples of 8 -> no realignment).
    wq = w_ref[_WQ_OFF:_WQ_OFF + D_IN, :]                # (32, 16)
    wk = w_ref[_WK_OFF:_WK_OFF + D_IN, :]
    wv = w_ref[_WV_OFF:_WV_OFF + D_IN, :]
    wo = w_ref[_WO_OFF:_WO_OFF + D, :]                   # (16, 16)
    bo = w_ref[_BO_OFF:_BO_OFF + 1, :]                   # (1, 16)

    # Projections: three (128,32)x(32,16) MXU pushes, outputs at lane offset 0.
    q = jnp.dot(x, wq, preferred_element_type=jnp.float32)   # (128, 16)
    k = jnp.dot(x, wk, preferred_element_type=jnp.float32)   # (128, 16)
    v = jnp.dot(x, wv, preferred_element_type=jnp.float32)   # (128, 16)

    # Q softmax over the feature axis (row-wise, valid across all stacked rows).
    # The combined 1/(sqrt(scale_factor) * N) factor is folded into the
    # normalizer (everything downstream up to the output bias is linear).
    q = jnp.exp(q - jnp.max(q, axis=-1, keepdims=True))
    q = q * (pl.reciprocal(jnp.sum(q, axis=-1, keepdims=True), approx=False)
             * INV_TOTAL_SCALE)

    # Per-instance views (pure sublane-axis split; tile-aligned, no data movement).
    qb = q.reshape(GROUP, N, D)
    kb = k.reshape(GROUP, N, D)
    vb = v.reshape(GROUP, N, D)

    # K softmax over the per-instance sequence axis (torch softmax(dim=-2)).
    kb = jnp.exp(kb - jnp.max(kb, axis=1, keepdims=True))
    kb = kb * pl.reciprocal(jnp.sum(kb, axis=1, keepdims=True), approx=False)

    # torch: matmul(q, v.transpose(-2,-1))  ==  q_sm @ V  (requires N == D).
    # TODO(synk): nn.Dropout(p=1) zeroes the tensor in train mode; eval-mode
    # (identity) dropout semantics are implemented here.
    attn = jnp.einsum('gnd,gdm->gnm', qb, vb,
                      preferred_element_type=jnp.float32)        # (G, N, D)

    # torch: matmul(output, k) with module-k = softmax(K, -2)^T.  Contract on
    # K's last (feature) dim directly — no transpose materialized.
    out = jnp.einsum('gnm,gsm->gns', attn, kb,
                     preferred_element_type=jnp.float32)         # (G, N, N)

    # B == 1: cat(unbind(output, -3), -1) just drops the batch dim.
    # to_out across all instances at once: (G*N, D) @ (D, D) + bias.
    out2d = out.reshape(GROUP * N, D)
    y = jnp.dot(out2d, wo, preferred_element_type=jnp.float32) + bo
    o_ref[...] = y.astype(o_ref.dtype)


def self_attention_forward(x_all, w_packed):
    """Run the module forward on `g_total` independent (B == 1) instances.

    x_all: (g_total, N, D_IN) — instance i is one module call on x[i][None].
    w_packed: output of pack_weights (computed once, reused every call).
    Returns (g_total, N, D).
    """
    g_total, n, d_in = x_all.shape
    assert n == N == D and d_in == D_IN
    assert g_total % GROUP == 0
    steps = g_total // GROUP

    x2d = x_all.reshape(g_total * N, D_IN)               # contiguous reshape

    y2d = pl.pallas_call(
        self_attention_kernel,
        out_shape=jax.ShapeDtypeStruct((g_total * N, D), jnp.float32),
        grid=(steps,),
        in_specs=[
            pl.BlockSpec((GROUP * N, D_IN), lambda i: (i, 0)),   # x group
            pl.BlockSpec((_W_ROWS, D), lambda i: (0, 0)),        # packed weights
        ],
        out_specs=pl.BlockSpec((GROUP * N, D), lambda i: (i, 0)),
        compiler_params=pltpu.CompilerParams(
            dimension_semantics=("parallel",)),                  # 2 TCs on v7x
    )(x2d, w_packed)
    return y2d.reshape(g_total, N, D)


def ref_forward_single(x, wq_t, wk_t, wv_t, wo_t, bo):
    """Pure-JAX transcription of the torch forward for one (B == 1) instance."""
    q = jax.nn.softmax(x @ wq_t, axis=-1)                 # (N, D)
    k = jax.nn.softmax(x @ wk_t, axis=-2).T               # (D, N)
    v = (x @ wv_t).T                                      # (D, N)
    out = (q @ v.T) / SCALE                               # (N, N), eval-mode dropout
    out = out @ k                                         # (N, N)
    out = out / out.shape[-1]
    return out @ wo_t + bo                                # (N, D)


if __name__ == "__main__":
    key = jax.random.PRNGKey(0)
    kx, kq, kk, kv, ko, kb = jax.random.split(key, 6)

    x_all = jax.random.normal(kx, (G_TOTAL, N, D_IN), dtype=jnp.float32)

    # Deterministic parameter init (torch.nn.Linear-style uniform bounds).
    bq = 1.0 / math.sqrt(D_IN)
    bo_bound = 1.0 / math.sqrt(D)
    wq_t = jax.random.uniform(kq, (D_IN, D), jnp.float32, -bq, bq)
    wk_t = jax.random.uniform(kk, (D_IN, D), jnp.float32, -bq, bq)
    wv_t = jax.random.uniform(kv, (D_IN, D), jnp.float32, -bq, bq)
    wo_t = jax.random.uniform(ko, (D, D), jnp.float32, -bo_bound, bo_bound)
    bo = jax.random.uniform(kb, (D,), jnp.float32, -bo_bound, bo_bound)

    # One-time weight packing (NOT on the per-forward critical path).
    w_packed = jax.block_until_ready(pack_weights(wq_t, wk_t, wv_t, wo_t, bo))

    out = self_attention_forward(x_all, w_packed)
    out = jax.block_until_ready(out)

    ref = jax.vmap(ref_forward_single, in_axes=(0, None, None, None, None, None))(
        x_all, wq_t, wk_t, wv_t, wo_t, bo)
    ref = jax.block_until_ready(ref)

    if not jnp.allclose(out, ref, atol=1e-5, rtol=1e-5):
        raise AssertionError("Pallas kernel output mismatch vs JAX reference")

    print("KERNEL_OK")
</pallas_src>

<mosaic_0001>
module attributes {stable_mosaic.version = 11 : i64} {
  func.func @self_attention_kernel(%arg0: i32, %arg1: memref<128x32xf32, #tpu.memory_space<vmem>>, %arg2: memref<120x16xf32, #tpu.memory_space<vmem>>, %arg3: memref<128x16xf32, #tpu.memory_space<vmem>>) attributes {dimension_semantics = [#tpu.dimension_semantics<parallel>], iteration_bounds = array<i64: 2>, scalar_prefetch = 0 : i64, scratch_operands = 0 : i64, tpu.core_type = #tpu.core_type<tc>, window_params = [{transform_indices = @transform_0, window_bounds = array<i64: 128, 32>}, {pipeline_mode = #tpu.pipeline_mode<synchronous>, transform_indices = @transform_1, window_bounds = array<i64: 120, 16>}, {transform_indices = @transform_2, window_bounds = array<i64: 128, 16>}]} {
    %c0 = arith.constant 0 : index
    %c0_0 = arith.constant 0 : index
    %0 = vector.load %arg1[%c0, %c0_0] : memref<128x32xf32, #tpu.memory_space<vmem>>, vector<128x32xf32>
    %c0_1 = arith.constant 0 : index
    %c0_2 = arith.constant 0 : index
    %1 = vector.load %arg2[%c0_1, %c0_2] : memref<120x16xf32, #tpu.memory_space<vmem>>, vector<32x16xf32>
    %c32 = arith.constant 32 : index
    %c0_3 = arith.constant 0 : index
    %2 = vector.load %arg2[%c32, %c0_3] : memref<120x16xf32, #tpu.memory_space<vmem>>, vector<32x16xf32>
    %c64 = arith.constant 64 : index
    %c0_4 = arith.constant 0 : index
    %3 = vector.load %arg2[%c64, %c0_4] : memref<120x16xf32, #tpu.memory_space<vmem>>, vector<32x16xf32>
    %c96 = arith.constant 96 : index
    %c0_5 = arith.constant 0 : index
    %4 = vector.load %arg2[%c96, %c0_5] : memref<120x16xf32, #tpu.memory_space<vmem>>, vector<16x16xf32>
    %c112 = arith.constant 112 : index
    %c0_6 = arith.constant 0 : index
    %5 = vector.load %arg2[%c112, %c0_6] : memref<120x16xf32, #tpu.memory_space<vmem>>, vector<1x16xf32>
    %cst = arith.constant dense<0.000000e+00> : vector<128x16xf32>
    %6 = tpu.matmul %0, %1, %cst {dimension_numbers = #tpu.dot_dimension_numbers<[1], [0], [0], [1], [0, 0, 1, 1], [], []>} : vector<128x32xf32>, vector<32x16xf32>, vector<128x16xf32> -> vector<128x16xf32>
    %cst_7 = arith.constant dense<0.000000e+00> : vector<128x16xf32>
    %7 = tpu.matmul %0, %2, %cst_7 {dimension_numbers = #tpu.dot_dimension_numbers<[1], [0], [0], [1], [0, 0, 1, 1], [], []>} : vector<128x32xf32>, vector<32x16xf32>, vector<128x16xf32> -> vector<128x16xf32>
    %cst_8 = arith.constant dense<0.000000e+00> : vector<128x16xf32>
    %8 = tpu.matmul %0, %3, %cst_8 {dimension_numbers = #tpu.dot_dimension_numbers<[1], [0], [0], [1], [0, 0, 1, 1], [], []>} : vector<128x32xf32>, vector<32x16xf32>, vector<128x16xf32> -> vector<128x16xf32>
    %cst_9 = arith.constant dense<0xFF800000> : vector<128xf32>
    %9 = vector.multi_reduction <maximumf>, %6, %cst_9 [1] : vector<128x16xf32> to vector<128xf32>
    %10 = vector.shape_cast %9 : vector<128xf32> to vector<128x1xf32>
    %11 = vector.broadcast %10 : vector<128x1xf32> to vector<128x16xf32>
    %12 = arith.subf %6, %11 : vector<128x16xf32>
    %13 = math.exp %12 : vector<128x16xf32>
    %cst_10 = arith.constant dense<0.000000e+00> : vector<128xf32>
    %14 = vector.multi_reduction <add>, %13, %cst_10 [1] : vector<128x16xf32> to vector<128xf32>
    %15 = vector.shape_cast %14 : vector<128xf32> to vector<128x1xf32>
    %16 = tpu.reciprocal %15 : vector<128x1xf32> -> vector<128x1xf32>
    %cst_11 = arith.constant 1.562500e-02 : f32
    %17 = vector.broadcast %cst_11 : f32 to vector<128x1xf32>
    %18 = arith.mulf %16, %17 : vector<128x1xf32>
    %19 = vector.broadcast %18 : vector<128x1xf32> to vector<128x16xf32>
    %20 = arith.mulf %13, %19 : vector<128x16xf32>
    %21 = vector.shape_cast %20 : vector<128x16xf32> to vector<8x16x16xf32>
    %22 = vector.shape_cast %7 : vector<128x16xf32> to vector<8x16x16xf32>
    %23 = vector.shape_cast %8 : vector<128x16xf32> to vector<8x16x16xf32>
    %cst_12 = arith.constant dense<0xFF800000> : vector<8x16xf32>
    %24 = vector.multi_reduction <maximumf>, %22, %cst_12 [1] : vector<8x16x16xf32> to vector<8x16xf32>
    %25 = vector.shape_cast %24 : vector<8x16xf32> to vector<8x1x16xf32>
    %26 = vector.broadcast %25 : vector<8x1x16xf32> to vector<8x16x16xf32>
    %27 = arith.subf %22, %26 : vector<8x16x16xf32>
    %28 = math.exp %27 : vector<8x16x16xf32>
    %cst_13 = arith.constant dense<0.000000e+00> : vector<8x16xf32>
    %29 = vector.multi_reduction <add>, %28, %cst_13 [1] : vector<8x16x16xf32> to vector<8x16xf32>
    %30 = vector.shape_cast %29 : vector<8x16xf32> to vector<8x1x16xf32>
    %31 = tpu.reciprocal %30 : vector<8x1x16xf32> -> vector<8x1x16xf32>
    %32 = vector.broadcast %31 : vector<8x1x16xf32> to vector<8x16x16xf32>
    %33 = arith.mulf %28, %32 : vector<8x16x16xf32>
    "tpu.trace_start"() <{level = 10 : i32, message = "gnd,gdm->gnm"}> : () -> ()
    %cst_14 = arith.constant dense<0.000000e+00> : vector<8x16x16xf32>
    %34 = tpu.matmul %21, %23, %cst_14 {dimension_numbers = #tpu.dot_dimension_numbers<[2], [1], [1], [2], [0, 0, 0, 1, 1, 2], [0], [0]>} : vector<8x16x16xf32>, vector<8x16x16xf32>, vector<8x16x16xf32> -> vector<8x16x16xf32>
    "tpu.trace_stop"() : () -> ()
    "tpu.trace_start"() <{level = 10 : i32, message = "gnm,gsm->gns"}> : () -> ()
    %cst_15 = arith.constant dense<0.000000e+00> : vector<8x16x16xf32>
    %35 = tpu.matmul %34, %33, %cst_15 {dimension_numbers = #tpu.dot_dimension_numbers<[2], [2], [1], [1], [0, 0, 0, 1, 1, 1], [0], [0]>} : vector<8x16x16xf32>, vector<8x16x16xf32>, vector<8x16x16xf32> -> vector<8x16x16xf32>
    "tpu.trace_stop"() : () -> ()
    %36 = vector.shape_cast %35 : vector<8x16x16xf32> to vector<128x16xf32>
    %cst_16 = arith.constant dense<0.000000e+00> : vector<128x16xf32>
    %37 = tpu.matmul %36, %4, %cst_16 {dimension_numbers = #tpu.dot_dimension_numbers<[1], [0], [0], [1], [0, 0, 1, 1], [], []>} : vector<128x16xf32>, vector<16x16xf32>, vector<128x16xf32> -> vector<128x16xf32>
    %38 = vector.broadcast %5 : vector<1x16xf32> to vector<128x16xf32>
    %39 = arith.addf %37, %38 : vector<128x16xf32>
    %c0_17 = arith.constant 0 : index
    %c0_18 = arith.constant 0 : index
    %40 = vector.load %arg3[%c0_17, %c0_18] : memref<128x16xf32, #tpu.memory_space<vmem>>, vector<128x16xf32>
    tpu.vector_store %arg3[%c0_17, %c0_18], %39 {strides = array<i32>} : memref<128x16xf32, #tpu.memory_space<vmem>>, vector<128x16xf32>,
    return
  }
  func.func @transform_0(%arg0: i32) -> (i32, i32) {
    %c0_i32 = arith.constant 0 : i32
    %c0_i32_0 = arith.constant 0 : i32
    return %arg0, %c0_i32 : i32, i32
  }
  func.func @transform_1(%arg0: i32) -> (i32, i32) {
    %c0_i32 = arith.constant 0 : i32
    %c0_i32_0 = arith.constant 0 : i32
    %c0_i32_1 = arith.constant 0 : i32
    return %c0_i32, %c0_i32_0 : i32, i32
  }
  func.func @transform_2(%arg0: i32) -> (i32, i32) {
    %c0_i32 = arith.constant 0 : i32
    %c0_i32_0 = arith.constant 0 : i32
    return %arg0, %c0_i32 : i32, i32
  }
}

</mosaic_0001>

<bundles_post_ra>
// kernel: tpu_custom_call.1
= control target key start
LH: loop header
LB: loop body
LE: loop exit
PB: predicated region body
PF: predicated region fallthrough
CT: control target
= control target key end

     0   :  { %s2120_s9 = smov 0   ;;  %s3011_s0 = inlined_call_operand.vmem [shape: f32[256,32], index: 0, kind: input, shape index: {}]   ;;  %s3012_s1 = inlined_call_operand.vmem [shape: f32[120,16], index: 1, kind: input, shape index: {}]   ;;  %s3013_s2 = inlined_call_operand.vmem [shape: f32[256,16], index: 2, kind: output, shape index: {}]  }
   0x1 LB: > { %s1841_s10 = sadd.s32 4294967295, %s2103_s9   ;;  %p1845_p0 = scmp.ge.s32.totalorder %s2103_s9, 1  ;;  %s2103_s9 = sphi %s2120_s9, %s12_s9  }
   0x2   : > { %p113_p1 = scmp.lt.s32.totalorder %s2103_s9, 3 }
   0x4   : > { %p114_p2 = pnand %p1845_p0, %p113_p1 }
   0x5   : > { %s1846_s15 = sshll.u32 (!%p114_p2), %s1841_s10, 4 }
   0x6   : > { %117 = sbr.rel (%p114_p2) target bundleno = 1005 (0x3ed), region = 28  ;;  %p136_p3 = scmp.lt.s32.totalorder (!%p114_p2), %s1846_s15, 31 }
   0xb   : > { %v166_v0 = vld [vmem:[%s3012_s1 + $0x18] sm:$0xff]  ;;  %v165_v1 = vld [vmem:[%s3012_s1 + $0x10] sm:$0xff]  ;;  %v164_v2 = vld [vmem:[%s3012_s1 + $0x8] sm:$0xff]  ;;  %s3043_s15 = smov (!%p136_p3, %s1846_s15), 31  ;;  %vm178_vm0 = vcmask 261120   ;;  %vm422_vm1 = vcmask 130048  }
   0xc   : > { %239 = vmatpush.msra.mxu0 %v166_v0  ;;  %1964 = vmatpush.msra.mxu1 %v166_v0  ;;  %v163_v3 = vld [vmem:[%s3012_s1] sm:$0xff]  ;;  %s1847_s20 = sshll.u32 %s3043_s15, 3  ;;  %v174_v29 = vld [vmem:[%s3012_s1 + $0x58] sm:$0xff]  ;;  %v173_v30 = vld [vmem:[%s3012_s1 + $0x50] sm:$0xff] }
   0xd   : > { %1965 = vmatpush.msra.mxu2 %v166_v0  ;;  %s2148_s23 = scalar_lea.vmem %s3011_s0, %s1847_s20  ;;  %v172_v31 = vld [vmem:[%s3012_s1 + $0x48] sm:$0xff]  ;;  %v171_v32 = vld [vmem:[%s3012_s1 + $0x40] sm:$0xff]  ;;  %v170_v42 = vld [vmem:[%s3012_s1 + $0x38] sm:$0xff] }
   0xe   : > { %240 = vmatpush.msra.mxu0 %v165_v1  ;;  %1966 = vmatpush.msra.mxu1 %v165_v1  ;;  %v2151_v4 = vld [vmem:[%s2148_s23] sm:$0xff]  ;;  %v2156_v5 = vld [vmem:[%s2148_s23 + $0x8] sm:$0xff]  ;;  %v2161_v6 = vld [vmem:[%s2148_s23 + $0x10] sm:$0xff] }
   0xf   : > { %1967 = vmatpush.msra.mxu2 %v165_v1  ;;  %v2166_v7 = vld [vmem:[%s2148_s23 + $0x18] sm:$0xff]  ;;  %v2171_v8 = vld [vmem:[%s2148_s23 + $0x20] sm:$0xff]  ;;  %v2176_v9 = vld [vmem:[%s2148_s23 + $0x28] sm:$0xff] }
  0x10   : > { %241 = vmatpush.msra.mxu0 %v164_v2  ;;  %1968 = vmatpush.msra.mxu1 %v164_v2  ;;  %v2181_v10 = vld [vmem:[%s2148_s23 + $0x30] sm:$0xff]  ;;  %v2186_v11 = vld [vmem:[%s2148_s23 + $0x38] sm:$0xff]  ;;  %v2191_v12 = vld [vmem:[%s2148_s23 + $0x40] sm:$0xff] }
  0x11   : > { %1969 = vmatpush.msra.mxu2 %v164_v2  ;;  %v2196_v13 = vld [vmem:[%s2148_s23 + $0x48] sm:$0xff]  ;;  %v2201_v14 = vld [vmem:[%s2148_s23 + $0x50] sm:$0xff]  ;;  %v2208_v16 = vld [vmem:[%s2148_s23 + $0x58] sm:$0xff] }
  0x12   : > { %242 = vmatpush.msra.mxu0 %v163_v3  ;;  %1970 = vmatpush.msra.mxu1 %v163_v3  ;;  %v2217_v19 = vld [vmem:[%s2148_s23 + $0x60] sm:$0xff]  ;;  %v2220_v20 = vld [vmem:[%s2148_s23 + $0x68] sm:$0xff]  ;;  %v2231_v23 = vld [vmem:[%s2148_s23 + $0x70] sm:$0xff] }
  0x13   : > { %1850 = vmatmul.msk.f32.vlgmr.msra.gmra.mxu0 %vm178_vm0, %v2151_v4  ;;  %1971 = vmatpush.msra.mxu2 %v163_v3  ;;  %v2240_v26 = vld [vmem:[%s2148_s23 + $0x78] sm:$0xff]  ;;  %v169_v43 = vld [vmem:[%s3012_s1 + $0x30] sm:$0xff]  ;;  %v168_v44 = vld [vmem:[%s3012_s1 + $0x28] sm:$0xff]  ;;  %s2974_s23 = scalar_lea.vmem %s3013_s2, %s1847_s20 }
  0x14   : > { %1859 = vmatmul.msk.f32.vlgmr.msra.gmra.mxu1 %vm178_vm0, %v2196_v13  ;;  %1863 = vmatmul.msk.f32.vlgmr.msra.gmra.mxu2 %vm178_vm0, %v2220_v20  ;;  %v167_v45 = vld [vmem:[%s3012_s1 + $0x20] sm:$0xff] }
  0x15   : > { %369 = vmatpush.msrb.mxu2 %v174_v29  ;;  %304 = vmatpush.msrb.mxu1 %v170_v42 }
  0x17   : > { %370 = vmatpush.msrb.mxu2 %v173_v30  ;;  %305 = vmatpush.msrb.mxu1 %v169_v43 }
  0x19   : > { %371 = vmatpush.msrb.mxu2 %v172_v31  ;;  %306 = vmatpush.msrb.mxu1 %v168_v44 }
  0x1b   : > { %1851 = vmatmul.msk.f32.gmra.mxu0 %vm178_vm0, %v2156_v5  ;;  %372 = vmatpush.msrb.mxu2 %v171_v32 }
  0x1c   : > { %1860 = vmatmul.msk.f32.gmra.mxu1 %vm178_vm0, %v2201_v14  ;;  %1864 = vmatmul.msk.f32.gmra.mxu2 %vm178_vm0, %v2231_v23 }
  0x1d   : > { %307 = vmatpush.msrb.mxu1 %v167_v45 }
  0x23   : > { %1852 = vmatmul.msk.f32.gmra.mxu0 %vm178_vm0, %v2161_v6 }
  0x24   : > { %1861 = vmatmul.msk.f32.gmra.mxu1 %vm178_vm0, %v2208_v16  ;;  %1865 = vmatmul.msk.f32.gmra.mxu2 %vm178_vm0, %v2240_v26 }
  0x2b   : > { %1853 = vmatmul.msk.f32.gmra.mxu0 %vm178_vm0, %v2166_v7 }
  0x2c   : > { %1862 = vmatmul.msk.f32.gmra.mxu1 %vm178_vm0, %v2217_v19  ;;  %1882 = vmatmul.msk.f32.vlgmr.msrb.gmra.mxu2 %vm178_vm0, %v2151_v4 }
  0x33   : > { %1854 = vmatmul.msk.f32.gmra.mxu0 %vm178_vm0, %v2171_v8 }
  0x34   : > { %1883 = vmatmul.msk.f32.gmra.mxu2 %vm178_vm0, %v2156_v5  ;;  %1866 = vmatmul.msk.f32.vlgmr.msrb.gmra.mxu1 %vm178_vm0, %v2151_v4 }
  0x3b   : > { %1855 = vmatmul.msk.f32.gmra.mxu0 %vm178_vm0, %v2176_v9 }
  0x3c   : > { %1884 = vmatmul.msk.f32.gmra.mxu2 %vm178_vm0, %v2161_v6  ;;  %1867 = vmatmul.msk.f32.gmra.mxu1 %vm178_vm0, %v2156_v5 }
  0x43   : > { %1856 = vmatmul.msk.f32.gmra.mxu0 %vm178_vm0, %v2181_v10 }
  0x44   : > { %1885 = vmatmul.msk.f32.gmra.mxu2 %vm178_vm0, %v2166_v7  ;;  %1868 = vmatmul.msk.f32.gmra.mxu1 %vm178_vm0, %v2161_v6 }
  0x4b   : > { %1857 = vmatmul.msk.f32.gmra.mxu0 %vm178_vm0, %v2186_v11 }
  0x4c   : > { %1886 = vmatmul.msk.f32.gmra.mxu2 %vm178_vm0, %v2171_v8  ;;  %1869 = vmatmul.msk.f32.gmra.mxu1 %vm178_vm0, %v2166_v7 }
  0x53   : > { %1858 = vmatmul.msk.f32.gmra.mxu0 %vm178_vm0, %v2191_v12 }
  0x54   : > { %1887 = vmatmul.msk.f32.gmra.mxu2 %vm178_vm0, %v2176_v9  ;;  %1870 = vmatmul.msk.f32.gmra.mxu1 %vm178_vm0, %v2171_v8 }
  0x5c   : > { %1888 = vmatmul.msk.f32.gmra.mxu2 %vm178_vm0, %v2181_v10  ;;  %1871 = vmatmul.msk.f32.gmra.mxu1 %vm178_vm0, %v2176_v9 }
  0x64   : > { %1889 = vmatmul.msk.f32.gmra.mxu2 %vm178_vm0, %v2186_v11  ;;  %1872 = vmatmul.msk.f32.gmra.mxu1 %vm178_vm0, %v2181_v10 }
  0x6c   : > { %1890 = vmatmul.msk.f32.gmra.mxu2 %vm178_vm0, %v2191_v12  ;;  %1873 = vmatmul.msk.f32.gmra.mxu1 %vm178_vm0, %v2186_v11 }
  0x74   : > { %1891 = vmatmul.msk.f32.gmra.mxu2 %vm178_vm0, %v2196_v13  ;;  %1874 = vmatmul.msk.f32.gmra.mxu1 %vm178_vm0, %v2191_v12 }
  0x7c   : > { %1892 = vmatmul.msk.f32.gmra.mxu2 %vm178_vm0, %v2201_v14  ;;  %1875 = vmatmul.msk.f32.gmra.mxu1 %vm178_vm0, %v2196_v13 }
  0x84   : > { %1893 = vmatmul.msk.f32.gmra.mxu2 %vm178_vm0, %v2208_v16  ;;  %1876 = vmatmul.msk.f32.gmra.mxu1 %vm178_vm0, %v2201_v14 }
  0x8c   : > { %1894 = vmatmul.msk.f32.gmra.mxu2 %vm178_vm0, %v2217_v19  ;;  %1877 = vmatmul.msk.f32.gmra.mxu1 %vm178_vm0, %v2208_v16 }
  0x90   : > { %v2205_v15 = vpop.f32.mrf.mxu0 }
  0x91   : > { %v423_v36 = vsel %vm422_vm1, %v2205_v15, -inf  ;;  %v2322_v51 = vpop.f32.mrf.mxu1 }
  0x92   : > { %v450_v57 = vsel %vm422_vm1, %v2322_v51, -inf }
  0x94   : > { %1895 = vmatmul.msk.f32.gmra.mxu2 %vm178_vm0, %v2220_v20  ;;  %1878 = vmatmul.msk.f32.gmra.mxu1 %vm178_vm0, %v2217_v19 }
  0x97   : > { %v2341_v62 = vpop.f32.mrf.mxu2 }
  0x98   : > { %v2212_v17 = vpop.f32.mrf.mxu0 }
  0x99   : > { %v426_v18 = vsel %vm422_vm1, %v2212_v17, -inf  ;;  %v2337_v60 = vpop.f32.mrf.mxu1 }
  0x9a   : > { %427 = vmax.xlane.f32.xlu0 %v426_v18  ;;  %v453_v1 = vsel %vm422_vm1, %v2337_v60, -inf }
  0x9c   : > { %1896 = vmatmul.msk.f32.gmra.mxu2 %vm178_vm0, %v2231_v23  ;;  %1879 = vmatmul.msk.f32.gmra.mxu1 %vm178_vm0, %v2220_v20 }
  0x9f   : > { %v2356_v6 = vpop.f32.mrf.mxu2 }
  0xa0   : > { %v2226_v21 = vpop.f32.mrf.mxu0 }
  0xa1   : > { %v429_v22 = vsel %vm422_vm1, %v2226_v21, -inf  ;;  %v2354_v5 = vpop.f32.mrf.mxu1 }
  0xa2   : > { %430 = vmax.xlane.f32.xlu0 %v429_v22 }
  0xa4   : > { %1897 = vmatmul.msk.f32.gmra.mxu2 %vm178_vm0, %v2240_v26  ;;  %1880 = vmatmul.msk.f32.gmra.mxu1 %vm178_vm0, %v2231_v23 }
  0xa8   : > { %v2235_v24 = vpop.f32.mrf.mxu0 }
  0xa9   : > { %v432_v25 = vsel %vm422_vm1, %v2235_v24, -inf  ;;  %v2373_v9 = vpop.f32.mrf.mxu1 }
  0xaa   : > { %433 = vmax.xlane.f32.xlu1 %v432_v25  ;;  %v459_v30 = vsel %vm422_vm1, %v2373_v9, -inf }
  0xac   : > { %1881 = vmatmul.msk.f32.gmra.mxu1 %vm178_vm0, %v2240_v26 }
  0xb0   : > { %v2244_v27 = vpop.f32.mrf.mxu0 }
  0xb1   : > { %v435_v28 = vsel %vm422_vm1, %v2244_v27, -inf }
  0xb2   : > { %436 = vmax.xlane.f32.xlu1 %v435_v28 }
  0xb8   : > { %v2260_v33 = vpop.f32.mrf.mxu0 }
  0xb9   : > { %v438_v34 = vsel %vm422_vm1, %v2260_v33, -inf }
  0xba   : > { %439 = vmax.xlane.f32.xlu2 %v438_v34 }
  0xc0   : > { %v2266_v35 = vpop.f32.mrf.mxu0 }
  0xc1   : > { %v441_v37 = vsel %vm422_vm1, %v2266_v35, -inf }
  0xc2   : > { %424 = vmax.xlane.f32.xlu2 %v423_v36  ;;  %442 = vmax.xlane.f32.xlu0 %v441_v37  ;;  %v462_v36 = vsel %vm422_vm1, %v2341_v62, -inf }
  0xc8   : > { %v2274_v38 = vpop.f32.mrf.mxu0 }
  0xc9   : > { %v444_v39 = vsel %vm422_vm1, %v2274_v38, -inf }
  0xca   : > { %445 = vmax.xlane.f32.xlu1 %v444_v39 }
  0xd0   : > { %v2280_v40 = vpop.f32.mrf.mxu0 }
  0xd1   : > { %v447_v41 = vsel %vm422_vm1, %v2280_v40, -inf }
  0xd2   : > { %448 = vmax.xlane.f32.xlu0 %v447_v41 }
 0x10d   : > { %v428_v46 = vpop.xlane.xlu0 %427 }
 0x10e   : > { %v472_v47 = vsub.f32 %v2212_v17, %v428_v46  ;;  %v456_v17 = vsel %vm422_vm1, %v2354_v5, -inf }
 0x110   : > { %v489_v48 = vmul.f32 1.442695, %v472_v47  ;;  %v465_v47 = vsel %vm422_vm1, %v2356_v6, -inf }
 0x112   : > { %1985 = vpow2.f32 %v489_v48 }
 0x115   : > { %v431_v49 = vpop.xlane.xlu0 %430 }
 0x116   : > { %v473_v50 = vsub.f32 %v2226_v21, %v431_v49 }
 0x118   : > { %v2324_v52 = vpop.eup %1985  ;;  %v491_v53 = vmul.f32 1.442695, %v473_v50  ;;  %v309_v50 = vpop.f32.mrf.mxu1 }
 0x119   : > { %v522_v54 = vsel %vm422_vm1, %v2324_v52, 0.0 }
 0x11a   : > { %1987 = vpow2.f32 %v491_v53  ;;  %523 = vadd.xlane.f32.xlu2 %v522_v54  ;;  %v823_v54 = vsel %vm422_vm1, %v309_v50, -inf }
 0x11d   : > { %v434_v55 = vpop.xlane.xlu1 %433 }
 0x11e   : > { %v474_v56 = vsub.f32 %v2235_v24, %v434_v55  ;;  %v2375_v24 = vpop.f32.mrf.mxu2 }
 0x11f   : > { %v468_v12 = vsel %vm422_vm1, %v2375_v24, -inf }
 0x120   : > { %v2335_v58 = vpop.eup %1987  ;;  %v493_v59 = vmul.f32 1.442695, %v474_v56  ;;  %v312_v16 = vpop.f32.mrf.mxu1 }
 0x121   : > { %v525_v61 = vsel %vm422_vm1, %v2335_v58, 0.0  ;;  %v824_v19 = vsel %vm422_vm1, %v312_v16, -inf }
 0x122   : > { %1989 = vpow2.f32 %v493_v59  ;;  %451 = vmax.xlane.f32.xlu2 %v450_v57  ;;  %526 = vadd.xlane.f32.xlu1 %v525_v61  ;;  %v825_v55 = vmax.f32 %v823_v54, %v824_v19 }
 0x124   : > { %v826_v20 = vrot.slane %v825_v55, 4 }
 0x125   : > { %v437_v63 = vpop.xlane.xlu1 %436 }
 0x126   : > { %v475_v0 = vsub.f32 %v2244_v27, %v437_v63  ;;  %v374_v34 = vpop.f32.mrf.mxu2  ;;  %v827_v57 = vmax.f32 %v825_v55, %v826_v20 }
 0x128   : > { %v2350_v2 = vpop.eup %1989  ;;  %v495_v3 = vmul.f32 1.442695, %v475_v0 }
 0x129   : > { %v528_v4 = vsel %vm422_vm1, %v2350_v2, 0.0 }
 0x12a   : > { %1991 = vpow2.f32 %v495_v3  ;;  %454 = vmax.xlane.f32.xlu1 %v453_v1  ;;  %529 = vadd.xlane.f32.xlu0 %v528_v4  ;;  %v828_v1 = vrot.slane %v827_v57, 2 }
 0x12d   : > { %v440_v7 = vpop.xlane.xlu2 %439 }
 0x12e   : > { %v476_v8 = vsub.f32 %v2260_v33, %v440_v7  ;;  %v377_v44 = vpop.f32.mrf.mxu2  ;;  %v829_v7 = vmax.f32 %v827_v57, %v828_v1 }
 0x12f   : > { %1163 = vmatpush.msra.mxu2 %v377_v44  ;;  %1972 = vmatpush.msra.mxu3 %v377_v44 }
 0x130   : > { %v2365_v18 = vpop.eup %1991  ;;  %v497_v21 = vmul.f32 1.442695, %v476_v8 }
 0x131   : > { %v531_v22 = vsel %vm422_vm1, %v2365_v18, 0.0  ;;  %1164 = vmatpush.msra.mxu2 %v374_v34  ;;  %1973 = vmatpush.msra.mxu3 %v374_v34 }
 0x132   : > { %1993 = vpow2.f32 %v497_v21  ;;  %532 = vadd.xlane.f32.xlu2 %v531_v22  ;;  %457 = vmax.xlane.f32.xlu0 %v456_v17  ;;  %v830_v21 = vrot.slane %v829_v7, 1 }
 0x135   : > { %v425_v25 = vpop.xlane.xlu2 %424  ;;  %v443_v27 = vpop.xlane.xlu0 %442 }
 0x136   : > { %v471_v28 = vsub.f32 %v2205_v15, %v425_v25  ;;  %v477_v29 = vsub.f32 %v2266_v35, %v443_v27  ;;  %v380_v13 = vpop.f32.mrf.mxu2 }
 0x138   : > { %v2381_v31 = vpop.eup %1993  ;;  %v487_v32 = vmul.f32 1.442695, %v471_v28  ;;  %v499_v10 = vmul.f32 1.442695, %v477_v29 }
 0x139   : > { %v534_v33 = vsel %vm422_vm1, %v2381_v31, 0.0 }
 0x13a   : > { %1995 = vpow2.f32 %v487_v32  ;;  %460 = vmax.xlane.f32.xlu2 %v459_v30  ;;  %535 = vadd.xlane.f32.xlu1 %v534_v33  ;;  %v831_v30 = vmax.f32 %v829_v7, %v830_v21 }
 0x13b   : > { %1997 = vpow2.f32 %v499_v10 }
 0x13c   : > { %v895_v34 = vsub.f32 %v309_v50, %v831_v30 }
 0x13d   : > { %v446_v15 = vpop.xlane.xlu1 %445 }
 0x13e   : > { %v478_v35 = vsub.f32 %v2274_v38, %v446_v15  ;;  %v383_v53 = vpop.f32.mrf.mxu2 }
 0x13f   : > { %1192 = vmatpush.msrb.mxu3 %v383_v53 }
 0x140   : > { %v2390_v37 = vpop.eup %1995  ;;  %v501_v39 = vmul.f32 1.442695, %v478_v35  ;;  %v896_v35 = vsub.f32 %v312_v16, %v831_v30 }
 0x141   : > { %v2392_v41 = vpop.eup %1997  ;;  %v519_v42 = vsel %vm422_vm1, %v2390_v37, 0.0  ;;  %1193 = vmatpush.msrb.mxu3 %v380_v13 }
 0x142   : > { %1999 = vpow2.f32 %v501_v39  ;;  %463 = vmax.xlane.f32.xlu2 %v462_v36  ;;  %v537_v11 = vsel %vm422_vm1, %v2392_v41, 0.0  ;;  %520 = vadd.xlane.f32.xlu0 %v519_v42 }
 0x143   : > { %538 = vadd.xlane.f32.xlu1 %v537_v11 }
 0x145   : > { %v449_v38 = vpop.xlane.xlu0 %448 }
 0x146   : > { %v479_v43 = vsub.f32 %v2280_v40, %v449_v38  ;;  %v2429_v23 = vpop.f32.mrf.mxu2 }
 0x148   : > { %v2401_v45 = vpop.eup %1999  ;;  %v503_v46 = vmul.f32 1.442695, %v479_v43 }
 0x149   : > { %v540_v48 = vsel %vm422_vm1, %v2401_v45, 0.0 }
 0x14a   : > { %2001 = vpow2.f32 %v503_v46  ;;  %541 = vadd.xlane.f32.xlu0 %v540_v48  ;;  %v911_v46 = vmul.f32 1.442695, %v895_v34 }
 0x14b   : > { %466 = vmax.xlane.f32.xlu1 %v465_v47 }
 0x14e   : > { %v389_v36 = vpop.f32.mrf.mxu2 }
 0x150   : > { %v2411_v40 = vpop.eup %2001 }
 0x151   : > { %v543_v49 = vsel %vm422_vm1, %v2411_v40, 0.0 }
 0x152   : > { %469 = vmax.xlane.f32.xlu0 %v468_v12  ;;  %544 = vadd.xlane.f32.xlu2 %v543_v49 }
 0x18d   : > { %v524_v14 = vpop.xlane.xlu2 %523 }
 0x18e   : > { %2003 = vrcp.f32 %v524_v14  ;;  %v592_v8 = vand.u32 2147483648, %v524_v14  ;;  %vm586_vm3 = vweird.f32 %v524_v14  ;;  %v590_v17 = vand.u32 2147483647, %v524_v14 }
 0x190   : > { %v593_v10 = vor.u32 1.1754944e-38, %v592_v8  ;;  %vm591_vm5 = vcmp.eq.f32.partialorder %v590_v17, 8.507059e+37  ;;  %v2472_v8 = vpop.f32.mrf.mxu1 }
 0x194   : > { %v2004_v56 = vpop.eup %2003 }
 0x195   : > { %v582_v59 = vmul.f32 %v2004_v56, %v524_v14  ;;  %v452_v26 = vpop.xlane.xlu2 %451  ;;  %v527_v61 = vpop.xlane.xlu1 %526  ;;  %vm587_vm2 = vweird.f32 %v2004_v56 }
 0x196   : > { %v480_v63 = vsub.f32 %v2322_v51, %v452_v26  ;;  %2005 = vrcp.f32 %v527_v61  ;;  %vm2432_vm4 = vmor %vm586_vm3, %vm587_vm2  ;;  %v606_v42 = vand.u32 2147483648, %v527_v61  ;;  %v604_v47 = vand.u32 2147483647, %v527_v61 }
 0x197   : > { %v583_v0 = vsub.f32 1.0, %v582_v59  ;;  %vm600_vm7 = vweird.f32 %v527_v61 }
 0x198   : > { %v505_v3 = vmul.f32 1.442695, %v480_v63  ;;  %v607_v53 = vor.u32 1.1754944e-38, %v606_v42  ;;  %vm605_vm9 = vcmp.eq.f32.partialorder %v604_v47, 8.507059e+37 }
 0x199   : > { %v584_v4 = vmul.f32 %v2004_v56, %v583_v0  ;;  %v2461_v0 = vpop.f32.mrf.mxu2 }
 0x19a   : > { %2007 = vpow2.f32 %v505_v3 }
 0x19b   : > { %v585_v22 = vadd.f32 %v2004_v56, %v584_v4 }
 0x19c   : > { %v2006_v25 = vpop.eup %2005 }
 0x19d   : > { %v596_v28 = vmul.f32 %v2006_v25, %v527_v61  ;;  %v455_v51 = vpop.xlane.xlu1 %454  ;;  %v2436_v29 = vpop.xlane.xlu0 %529  ;;  %v589_v32 = vsel %vm2432_vm4, %v2004_v56, %v585_v22  ;;  %vm601_vm6 = vweird.f32 %v2006_v25 }
 0x19e   : > { %v481_v33 = vsub.f32 %v2337_v60, %v455_v51  ;;  %2009 = vrcp.f32 %v2436_v29  ;;  %v594_v38 = vsel %vm591_vm5, %v593_v10, %v589_v32  ;;  %v913_v60 = vmul.f32 1.442695, %v896_v35  ;;  %vm602_vm8 = vmor %vm600_vm7, %vm601_vm6 }
 0x19f   : > { %v597_v15 = vsub.f32 1.0, %v596_v28  ;;  %v792_v48 = vmul.f32 0.015625, %v594_v38  ;;  %v618_v1 = vand.u32 2147483647, %v2436_v29  ;;  %vm614_vm11 = vweird.f32 %v2436_v29 }
 0x1a0   : > { %v2442_v39 = vpop.eup %2007  ;;  %v507_v11 = vmul.f32 1.442695, %v481_v33 }
 0x1a1   : > { %v598_v43 = vmul.f32 %v2006_v25, %v597_v15  ;;  %v546_v44 = vsel %vm422_vm1, %v2442_v39, 0.0  ;;  %v808_v13 = vmul.f32 %v2324_v52, %v792_v48  ;;  %v620_v52 = vand.u32 2147483648, %v2436_v29  ;;  %v395_v47 = vpop.f32.mrf.mxu2 }
 0x1a2   : > { %2011 = vpow2.f32 %v507_v11  ;;  %547 = vadd.xlane.f32.xlu1 %v546_v44  ;;  %vm619_vm13 = vcmp.eq.f32.partialorder %v618_v1, 8.507059e+37  ;;  %v832_v11 = vsel %vm422_vm1, %v2472_v8, -inf }
 0x1a3   : > { %v599_v12 = vadd.f32 %v2006_v25, %v598_v43  ;;  %2013 = vpow2.f32 %v911_v46  ;;  %1899 = vmatmul.msk.f32.vlgmr.msra.gmra.mxu3 %vm422_vm1, %v808_v13  ;;  %v621_v22 = vor.u32 1.1754944e-38, %v620_v52  ;;  %v2491_v46 = vpop.f32.mrf.mxu1 }
 0x1a4   : > { %v2010_v49 = vpop.eup %2009  ;;  %2015 = vpow2.f32 %v913_v60  ;;  %1221 = vmatpush.msra.mxu3 %v389_v36 }
 0x1a5   : > { %v603_v50 = vsel %vm602_vm8, %v2006_v25, %v599_v12  ;;  %v610_v14 = vmul.f32 %v2010_v49, %v2436_v29  ;;  %v2448_v54 = vpop.xlane.xlu2 %532  ;;  %v458_v16 = vpop.xlane.xlu0 %457  ;;  %vm615_vm10 = vweird.f32 %v2010_v49 }
 0x1a6   : > { %2017 = vrcp.f32 %v2448_v54  ;;  %v482_v55 = vsub.f32 %v2354_v5, %v458_v16  ;;  %v608_v20 = vsel %vm605_vm9, %v607_v53, %v603_v50  ;;  %1222 = vmatpush.msra.mxu3 %v2429_v23  ;;  %vm616_vm12 = vmor %vm614_vm11, %vm615_vm10  ;;  %v634_v36 = vand.u32 2147483648, %v2448_v54 }
 0x1a7   : > { %v611_v19 = vsub.f32 1.0, %v610_v14  ;;  %v793_v57 = vmul.f32 0.015625, %v608_v20  ;;  %vm628_vm15 = vweird.f32 %v2448_v54  ;;  %v632_v44 = vand.u32 2147483647, %v2448_v54 }
 0x1a8   : > { %v2453_v56 = vpop.eup %2011  ;;  %v509_v61 = vmul.f32 1.442695, %v482_v55  ;;  %v635_v16 = vor.u32 1.1754944e-38, %v634_v36 }
 0x1a9   : > { %v2456_v59 = vpop.eup %2013  ;;  %v612_v26 = vmul.f32 %v2010_v49, %v611_v19  ;;  %v549_v63 = vsel %vm422_vm1, %v2453_v56, 0.0  ;;  %v809_v4 = vmul.f32 %v2335_v58, %v793_v57  ;;  %vm633_vm2 = vcmp.eq.f32.partialorder %v632_v44, 8.507059e+37 }
 0x1aa   : > { %v2463_v5 = vpop.eup %2015  ;;  %v943_v3 = vsel %vm422_vm1, %v2456_v59, 0.0  ;;  %550 = vadd.xlane.f32.xlu2 %v549_v63  ;;  %2019 = vpow2.f32 %v509_v61 }
 0x1ab   : > { %v944_v7 = vsel %vm422_vm1, %v2463_v5, 0.0  ;;  %v613_v23 = vadd.f32 %v2010_v49, %v612_v26  ;;  %1900 = vmatmul.msk.f32.vlgmr.msrb.gmra.mxu3 %vm422_vm1, %v809_v4 }
 0x1ac   : > { %v2018_v17 = vpop.eup %2017  ;;  %v945_v21 = vadd.f32 %v944_v7, %v943_v3  ;;  %1250 = vmatpush.msrb.mxu3 %v395_v47 }
 0x1ad   : > { %v624_v25 = vmul.f32 %v2018_v17, %v2448_v54  ;;  %v461_v27 = vpop.xlane.xlu2 %460  ;;  %v2476_v28 = vpop.xlane.xlu1 %535  ;;  %v617_v58 = vsel %vm616_vm12, %v2010_v49, %v613_v23  ;;  %vm629_vm14 = vweird.f32 %v2018_v17 }
 0x1ae   : > { %v946_v51 = vrot.slane %v945_v21, 4  ;;  %v483_v29 = vsub.f32 %v2373_v9, %v461_v27  ;;  %2021 = vrcp.f32 %v2476_v28  ;;  %v622_v32 = vsel %vm619_vm13, %v621_v22, %v617_v58  ;;  %vm2495_vm0 = vmor %vm628_vm15, %vm629_vm14  ;;  %1251 = vmatpush.msrb.mxu3 %v2461_v0 }
 0x1af   : > { %v625_v30 = vsub.f32 1.0, %v624_v25  ;;  %v794_v15 = vmul.f32 0.015625, %v622_v32  ;;  %v648_v20 = vand.u32 2147483648, %v2476_v28  ;;  %v2539_v32 = vpop.f32.mrf.mxu2  ;;  %vm642_vm8 = vweird.f32 %v2476_v28 }
 0x1b0   : > { %v947_v10 = vadd.f32 %v946_v51, %v945_v21  ;;  %v511_v33 = vmul.f32 1.442695, %v483_v29  ;;  %v2481_v34 = vpop.eup %2019  ;;  %v646_v21 = vand.u32 2147483647, %v2476_v28 }
 0x1b1   : > { %v626_v35 = vmul.f32 %v2018_v17, %v625_v30  ;;  %v552_v9 = vsel %vm422_vm1, %v2481_v34, 0.0  ;;  %v810_v38 = vmul.f32 %v2350_v2, %v794_v15  ;;  %v833_v2 = vsel %vm422_vm1, %v2491_v46, -inf }
 0x1b2   : > { %v948_v42 = vrot.slane %v947_v10, 2  ;;  %553 = vadd.xlane.f32.xlu0 %v552_v9  ;;  %2023 = vpow2.f32 %v511_v33  ;;  %v834_v50 = vmax.f32 %v832_v11, %v833_v2  ;;  %v2526_v22 = vor.u32 1.1754944e-38, %v648_v20 }
 0x1b3   : > { %v627_v43 = vadd.f32 %v2018_v17, %v626_v35  ;;  %1901 = vmatmul.msk.f32.gmra.mxu3 %vm422_vm1, %v810_v38  ;;  %v2548_v35 = vpop.f32.mrf.mxu1  ;;  %vm2565_vm10 = vcmp.eq.f32.partialorder %v646_v21, 8.507059e+37 }
 0x1b4   : > { %v2493_v60 = vpop.eup %2021  ;;  %v949_v48 = vadd.f32 %v948_v42, %v947_v10  ;;  %v835_v52 = vrot.slane %v834_v50, 4 }
 0x1b5   : > { %v631_v49 = vsel %vm2495_vm0, %v2018_v17, %v627_v43  ;;  %v638_v13 = vmul.f32 %v2493_v60, %v2476_v28  ;;  %v464_v53 = vpop.xlane.xlu2 %463  ;;  %v2505_v14 = vpop.xlane.xlu0 %520  ;;  %vm643_vm3 = vweird.f32 %v2493_v60 }
 0x1b6   : > { %v950_v54 = vrot.slane %v949_v48, 1  ;;  %v484_v19 = vsub.f32 %v2341_v62, %v464_v53  ;;  %v2509_v55 = vpop.xlane.xlu1 %538  ;;  %2025 = vrcp.f32 %v2505_v14  ;;  %v636_v26 = vsel %vm633_vm2, %v635_v16, %v631_v49 }
 0x1b7   : > { %2027 = vrcp.f32 %v2509_v55  ;;  %v639_v61 = vsub.f32 1.0, %v638_v13  ;;  %v836_v1 = vmax.f32 %v834_v50, %v835_v52  ;;  %v662_v62 = vand.u32 2147483648, %v2509_v55 }
 0x1b8   : > { %v2515_v57 = vadd.f32 %v950_v54, %v949_v48  ;;  %v513_v63 = vmul.f32 1.442695, %v484_v19  ;;  %v2517_v3 = vpop.eup %2023  ;;  %v795_v7 = vmul.f32 0.015625, %v636_v26  ;;  %v660_v25 = vand.u32 2147483647, %v2509_v55 }
 0x1b9   : > { %v837_v23 = vrot.slane %v836_v1, 2  ;;  %v640_v0 = vmul.f32 %v2493_v60, %v639_v61  ;;  %vm572_vm4 = vweird.f32 %v2505_v14  ;;  %v555_v29 = vsel %vm422_vm1, %v2517_v3, 0.0 }
 0x1ba   : > { %2029 = vrcp.f32 %v2515_v57  ;;  %v1024_v4 = vand.u32 2147483647, %v2515_v57  ;;  %vm1020_vm5 = vweird.f32 %v2515_v57  ;;  %v1026_v10 = vand.u32 2147483648, %v2515_v57  ;;  %556 = vadd.xlane.f32.xlu1 %v555_v29 }
 0x1bb   : > { %2031 = vpow2.f32 %v513_v63  ;;  %v838_v58 = vmax.f32 %v836_v1, %v837_v23  ;;  %vm656_vm6 = vweird.f32 %v2509_v55  ;;  %v2546_v15 = vor.u32 1.1754944e-38, %v662_v62 }
 0x1bc   : > { %v2522_v17 = vpop.eup %2025  ;;  %vm2550_vm7 = vcmp.eq.f32.partialorder %v1024_v4, 8.507059e+37  ;;  %v811_v38 = vmul.f32 %v2365_v18, %v795_v7  ;;  %v576_v47 = vand.u32 2147483647, %v2505_v14  ;;  %vm2570_vm12 = vcmp.eq.f32.partialorder %v660_v25, 8.507059e+37  ;;  %v2602_v25 = vpop.f32.mrf.mxu1 }
 0x1bd   : > { %v2529_v27 = vpop.eup %2027  ;;  %v568_v51 = vmul.f32 %v2522_v17, %v2505_v14  ;;  %v2537_v30 = vpop.xlane.xlu0 %541  ;;  %v839_v11 = vrot.slane %v838_v58, 1  ;;  %vm573_vm9 = vweird.f32 %v2522_v17  ;;  %v578_v53 = vand.u32 2147483648, %v2505_v14 }
 0x1be   : > { %v652_v33 = vmul.f32 %v2529_v27, %v2509_v55  ;;  %v467_v36 = vpop.xlane.xlu1 %466  ;;  %2033 = vrcp.f32 %v2537_v30  ;;  %1902 = vmatmul.msk.f32.vlgmr.msra.gmra.mxu3 %vm422_vm1, %v811_v38  ;;  %vm657_vm13 = vweird.f32 %v2529_v27  ;;  %vm2582_vm14 = vmor %vm572_vm4, %vm573_vm9  ;;  %v1027_v23 = vor.u32 1.1754944e-38, %v1026_v10 }
 0x1bf   : > { %v569_v9 = vsub.f32 1.0, %v568_v51  ;;  %v485_v48 = vsub.f32 %v2356_v6, %v467_v36  ;;  %v840_v49 = vmax.f32 %v838_v58, %v839_v11  ;;  %v579_v21 = vor.u32 1.1754944e-38, %v578_v53  ;;  %vm2610_vm0 = vmor %vm656_vm6, %vm657_vm13 }
 0x1c0   : > { %v2030_v43 = vpop.eup %2029  ;;  %v653_v44 = vsub.f32 1.0, %v652_v33  ;;  %v641_v58 = vadd.f32 %v2493_v60, %v640_v0  ;;  %vm577_vm2 = vcmp.eq.f32.partialorder %v576_v47, 8.507059e+37  ;;  %v841_v51 = vsel %vm422_vm1, %v2548_v35, -inf  ;;  %vm2620_vm4 = vmor %vm642_vm8, %vm643_vm3  ;;  %v401_v33 = vpop.f32.mrf.mxu2 }
 0x1c1   : > { %v2559_v12 = vpop.eup %2031  ;;  %v1016_v2 = vmul.f32 %v2030_v43, %v2515_v57  ;;  %v570_v13 = vmul.f32 %v2522_v17, %v569_v9  ;;  %vm1021_vm11 = vweird.f32 %v2030_v43  ;;  %v515_v54 = vmul.f32 1.442695, %v485_v48  ;;  %1279 = vmatpush.msra.mxu3 %v401_v33 }
 0x1c2   : > { %v654_v6 = vmul.f32 %v2529_v27, %v653_v44  ;;  %v897_v19 = vsub.f32 %v2472_v8, %v840_v49  ;;  %v898_v20 = vsub.f32 %v2491_v46, %v840_v49  ;;  %v558_v63 = vsel %vm422_vm1, %v2559_v12, 0.0  ;;  %vm2598_vm15 = vmor %vm1020_vm5, %vm1021_vm11 }
 0x1c3   : > { %v1017_v16 = vsub.f32 1.0, %v1016_v2  ;;  %v571_v52 = vadd.f32 %v2522_v17, %v570_v13  ;;  %2035 = vpow2.f32 %v515_v54  ;;  %559 = vadd.xlane.f32.xlu2 %v558_v63  ;;  %vm670_vm5 = vweird.f32 %v2537_v30  ;;  %1280 = vmatpush.msra.mxu3 %v2539_v32 }
 0x1c4   : > { %v655_v26 = vadd.f32 %v2529_v27, %v654_v6  ;;  %v915_v8 = vmul.f32 1.442695, %v897_v19  ;;  %v917_v62 = vmul.f32 1.442695, %v898_v20  ;;  %v2593_v7 = vpop.eup %2033  ;;  %v842_v28 = vsel %vm422_vm1, %v2602_v25, -inf }
 0x1c5   : > { %v1018_v1 = vmul.f32 %v2030_v43, %v1017_v16  ;;  %v575_v46 = vsel %vm2582_vm14, %v2522_v17, %v571_v52  ;;  %v2591_v4 = vpop.xlane.xlu2 %544  ;;  %v666_v10 = vmul.f32 %v2593_v7, %v2537_v30  ;;  %v645_v11 = vsel %vm2620_vm4, %v2493_v60, %v641_v58  ;;  %v470_v9 = vpop.xlane.xlu0 %469 }
 0x1c6   : > { %2037 = vrcp.f32 %v2591_v4  ;;  %v659_v55 = vsel %vm2610_vm0, %v2529_v27, %v655_v26  ;;  %v580_v29 = vsel %vm577_vm2, %v579_v21, %v575_v46  ;;  %v843_v47 = vmax.f32 %v841_v51, %v842_v28 }
 0x1c7   : > { %v1019_v17 = vadd.f32 %v2030_v43, %v1018_v1  ;;  %2039 = vpow2.f32 %v915_v8  ;;  %v667_v44 = vsub.f32 1.0, %v666_v10  ;;  %v664_v60 = vsel %vm2570_vm12, %v2546_v15, %v659_v55 }
 0x1c8   : > { %2041 = vpow2.f32 %v917_v62  ;;  %v791_v2 = vmul.f32 0.015625, %v580_v29  ;;  %v844_v6 = vrot.slane %v843_v47, 4  ;;  %v486_v18 = vsub.f32 %v2375_v24, %v470_v9 }
 0x1c9   : > { %v1023_v36 = vsel %vm2598_vm15, %v2030_v43, %v1019_v17  ;;  %v2637_v27 = vpop.eup %2035  ;;  %v650_v43 = vsel %vm2565_vm10, %v2526_v22, %v645_v11  ;;  %v668_v13 = vmul.f32 %v2593_v7, %v667_v44  ;;  %v674_v53 = vand.u32 2147483647, %v2537_v30 }
 0x1ca   : > { %v2641_v38 = vsel %vm2550_vm7, %v1027_v23, %v1023_v36  ;;  %v796_v49 = vmul.f32 0.015625, %v650_v43  ;;  %v561_v22 = vsel %vm422_vm1, %v2637_v27, 0.0  ;;  %v676_v15 = vand.u32 2147483648, %v2537_v30 }
 0x1cb   : > { %v2648_v48 = vmul.f32 %v2463_v5, %v2641_v38  ;;  %562 = vadd.xlane.f32.xlu0 %v561_v22  ;;  %vm671_vm3 = vweird.f32 %v2593_v7  ;;  %v845_v16 = vmax.f32 %v843_v47, %v844_v6  ;;  %v517_v19 = vmul.f32 1.442695, %v486_v18 }
 0x1cc   : > { %v2654_v42 = vpop.eup %2037  ;;  %v812_v50 = vmul.f32 %v2381_v31, %v796_v49  ;;  %v797_v52 = vmul.f32 0.015625, %v664_v60  ;;  %v807_v26 = vmul.f32 %v2390_v37, %v791_v2  ;;  %v669_v1 = vadd.f32 %v2593_v7, %v668_v13  ;;  %vm672_vm6 = vmor %vm670_vm5, %vm671_vm3 }
 0x1cd   : > { %v2660_v5 = vpop.eup %2039  ;;  %v680_v32 = vmul.f32 %v2654_v42, %v2591_v4  ;;  %v846_v63 = vrot.slane %v845_v16, 2  ;;  %2043 = vpow2.f32 %v517_v19  ;;  %v677_v46 = vor.u32 1.1754944e-38, %v676_v15 }
 0x1ce   : > { %v2667_v54 = vpop.eup %2041  ;;  %v952_v24 = vsel %vm422_vm1, %v2660_v5, 0.0  ;;  %1903 = vmatmul.msk.f32.gmra.mxu3 %vm422_vm1, %v812_v50  ;;  %1898 = vmatmul.msk.f32.vlgmr.msra.gmra.mxu2 %vm422_vm1, %v807_v26  ;;  %v673_v23 = vsel %vm672_vm6, %v2593_v7, %v669_v1  ;;  %v813_v21 = vmul.f32 %v2392_v41, %v797_v52  ;;  %vm675_vm7 = vcmp.eq.f32.partialorder %v674_v53, 8.507059e+37  ;;  %v327_v53 = vpop.f32.mrf.mxu1 }
 0x1cf   : > { %v953_v20 = vsel %vm422_vm1, %v2667_v54, 0.0  ;;  %v681_v31 = vsub.f32 1.0, %v680_v32  ;;  %v847_v14 = vmax.f32 %v845_v16, %v846_v63  ;;  %v678_v17 = vsel %vm675_vm7, %v677_v46, %v673_v23 }
 0x1d0   : > { %v954_v61 = vadd.f32 %v953_v20, %v952_v24  ;;  %vm685_vm8 = vweird.f32 %v2654_v42  ;;  %v690_v55 = vand.u32 2147483648, %v2591_v4  ;;  %vm684_vm9 = vweird.f32 %v2591_v4 }
 0x1d1   : > { %v682_v8 = vmul.f32 %v2654_v42, %v681_v31  ;;  %v848_v58 = vrot.slane %v847_v14, 1  ;;  %v688_v7 = vand.u32 2147483647, %v2591_v4  ;;  %v798_v29 = vmul.f32 0.015625, %v678_v17  ;;  %vm686_vm10 = vmor %vm684_vm9, %vm685_vm8 }
 0x1d2   : > { %v955_v62 = vrot.slane %v954_v61, 4  ;;  %v691_v47 = vor.u32 1.1754944e-38, %v690_v55  ;;  %v850_v26 = vsel %vm422_vm1, %v327_v53, -inf }
 0x1d3   : > { %v683_v57 = vadd.f32 %v2654_v42, %v682_v8  ;;  %v2685_v30 = vpop.eup %2043  ;;  %v849_v0 = vmax.f32 %v847_v14, %v848_v58  ;;  %vm689_vm11 = vcmp.eq.f32.partialorder %v688_v7, 8.507059e+37  ;;  %v814_v4 = vmul.f32 %v2401_v45, %v798_v29 }
 0x1d4   : > { %v956_v37 = vadd.f32 %v955_v62, %v954_v61  ;;  %v564_v41 = vsel %vm422_vm1, %v2685_v30, 0.0 }
 0x1d5   : > { %v899_v33 = vsub.f32 %v2548_v35, %v849_v0  ;;  %v900_v36 = vsub.f32 %v2602_v25, %v849_v0  ;;  %565 = vadd.xlane.f32.xlu1 %v564_v41  ;;  %v687_v28 = vsel %vm686_vm10, %v2654_v42, %v683_v57 }
 0x1d6   : > { %v957_v51 = vrot.slane %v956_v37, 2  ;;  %1904 = vmatmul.msk.f32.vlgmr.msrb.gmra.mxu3 %vm422_vm1, %v813_v21  ;;  %v692_v60 = vsel %vm689_vm11, %v691_v47, %v687_v28  ;;  %v330_v63 = vpop.f32.mrf.mxu1 }
 0x1d7   : > { %v919_v9 = vmul.f32 1.442695, %v899_v33  ;;  %v921_v44 = vmul.f32 1.442695, %v900_v36  ;;  %v799_v2 = vmul.f32 0.015625, %v692_v60  ;;  %v851_v62 = vsel %vm422_vm1, %v330_v63, -inf  ;;  %v404_v60 = vpop.f32.mrf.mxu2 }
 0x1d8   : > { %v958_v10 = vadd.f32 %v957_v51, %v956_v37  ;;  %v852_v46 = vmax.f32 %v850_v26, %v851_v62 }
 0x1d9   : > { %2045 = vpow2.f32 %v919_v9  ;;  %v815_v42 = vmul.f32 %v2411_v40, %v799_v2 }
 0x1da   : > { %v959_v11 = vrot.slane %v958_v10, 1  ;;  %2047 = vpow2.f32 %v921_v44  ;;  %v853_v21 = vrot.slane %v852_v46, 4 }
 0x1dc   : > { %v960_v43 = vadd.f32 %v959_v11, %v958_v10  ;;  %v854_v37 = vmax.f32 %v852_v46, %v853_v21 }
 0x1de   : > { %2049 = vrcp.f32 %v960_v43  ;;  %1905 = vmatmul.msk.f32.gmra.mxu3 %vm422_vm1, %v814_v4  ;;  %vm1034_vm12 = vweird.f32 %v960_v43  ;;  %v1040_v22 = vand.u32 2147483648, %v960_v43  ;;  %v1038_v32 = vand.u32 2147483647, %v960_v43 }
 0x1df   : > { %v2698_v35 = vpop.eup %2045  ;;  %v855_v58 = vrot.slane %v854_v37, 2 }
 0x1e0   : > { %v2048_v25 = vpop.eup %2047  ;;  %v961_v49 = vsel %vm422_vm1, %v2698_v35, 0.0  ;;  %v1041_v19 = vor.u32 1.1754944e-38, %v1040_v22  ;;  %vm1039_vm15 = vcmp.eq.f32.partialorder %v1038_v32, 8.507059e+37 }
 0x1e1   : > { %v962_v6 = vsel %vm422_vm1, %v2048_v25, 0.0  ;;  %v856_v17 = vmax.f32 %v854_v37, %v855_v58 }
 0x1e2   : > { %v963_v45 = vadd.f32 %v962_v6, %v961_v49 }
 0x1e3   : > { %v857_v0 = vrot.slane %v856_v17, 1 }
 0x1e4   : > { %v2050_v13 = vpop.eup %2049  ;;  %v964_v15 = vrot.slane %v963_v45, 4 }
 0x1e5   : > { %v1030_v18 = vmul.f32 %v2050_v13, %v960_v43  ;;  %vm1035_vm13 = vweird.f32 %v2050_v13  ;;  %v858_v41 = vmax.f32 %v856_v17, %v857_v0 }
 0x1e6   : > { %1906 = vmatmul.msk.f32.vlgmr.msra.gmra.mxu3 %vm422_vm1, %v815_v42  ;;  %v965_v24 = vadd.f32 %v964_v15, %v963_v45  ;;  %vm1036_vm14 = vmor %vm1034_vm12, %vm1035_vm13 }
 0x1e7   : > { %v1031_v50 = vsub.f32 1.0, %v1030_v18  ;;  %v901_v10 = vsub.f32 %v327_v53, %v858_v41  ;;  %v902_v33 = vsub.f32 %v330_v63, %v858_v41  ;;  %v407_v18 = vpop.f32.mrf.mxu2 }
 0x1e8   : > { %v966_v20 = vrot.slane %v965_v24, 2  ;;  %1308 = vmatpush.msrb.mxu3 %v407_v18 }
 0x1e9   : > { %v1032_v16 = vmul.f32 %v2050_v13, %v1031_v50  ;;  %v923_v28 = vmul.f32 1.442695, %v901_v10  ;;  %v925_v11 = vmul.f32 1.442695, %v902_v33 }
 0x1ea   : > { %v967_v52 = vadd.f32 %v966_v20, %v965_v24  ;;  %1309 = vmatpush.msrb.mxu3 %v404_v60 }
 0x1eb   : > { %v1033_v40 = vadd.f32 %v2050_v13, %v1032_v16 }
 0x1ec   : > { %v968_v1 = vrot.slane %v967_v52, 1 }
 0x1ed   : > { %v1037_v31 = vsel %vm1036_vm14, %v2050_v13, %v1033_v40  ;;  %v2722_v13 = vpop.f32.mrf.mxu1 }
 0x1ee   : > { %v1042_v61 = vsel %vm1039_vm15, %v1041_v19, %v1037_v31  ;;  %v969_v14 = vadd.f32 %v968_v1, %v967_v52  ;;  %v859_v22 = vsel %vm422_vm1, %v2722_v13, -inf  ;;  %v2729_v52 = vmul.f32 %v2456_v59, %v2641_v38 }
 0x1ef   : > { %v1130_v8 = vmul.f32 %v2667_v54, %v1042_v61  ;;  %v1129_v23 = vmul.f32 %v2660_v5, %v1042_v61  ;;  %v410_v40 = vpop.f32.mrf.mxu2 }
 0x1f0   : > { %2051 = vrcp.f32 %v969_v14  ;;  %vm1048_vm0 = vweird.f32 %v969_v14  ;;  %v1054_v54 = vand.u32 2147483648, %v969_v14  ;;  %v1052_v7 = vand.u32 2147483647, %v969_v14 }
 0x1f1   : > { %1918 = vmatpush.xpose.msk.msrb.mxu0 %vm422_vm1, %v1130_v8  ;;  %2053 = vpow2.f32 %v923_v28 }
 0x1f2   : > { %v1055_v5 = vor.u32 1.1754944e-38, %v1054_v54  ;;  %vm1053_vm5 = vcmp.eq.f32.partialorder %v1052_v7, 8.507059e+37  ;;  %2055 = vpow2.f32 %v925_v11 }
 0x1f5   : > { %1919 = vmatpush.xpose.msk.msrb.mxu0 %vm422_vm1, %v1129_v23  ;;  %v336_v53 = vpop.f32.mrf.mxu1 }
 0x1f6   : > { %v2052_v57 = vpop.eup %2051  ;;  %v860_v50 = vsel %vm422_vm1, %v336_v53, -inf }
 0x1f7   : > { %v1044_v51 = vmul.f32 %v2052_v57, %v969_v14  ;;  %vm1049_vm2 = vweird.f32 %v2052_v57  ;;  %v2713_v43 = vpop.eup %2053  ;;  %v861_v32 = vmax.f32 %v859_v22, %v860_v50  ;;  %v413_v37 = vpop.f32.mrf.mxu2 }
 0x1f8   : > { %vm1050_vm4 = vmor %vm1048_vm0, %vm1049_vm2  ;;  %v2715_v2 = vpop.eup %2055  ;;  %v970_v49 = vsel %vm422_vm1, %v2713_v43, 0.0  ;;  %1337 = vmatpush.msra.mxu3 %v413_v37 }
 0x1f9   : > { %v1045_v55 = vsub.f32 1.0, %v1044_v51  ;;  %v971_v42 = vsel %vm422_vm1, %v2715_v2, 0.0  ;;  %v862_v20 = vrot.slane %v861_v32, 4 }
 0x1fa   : > { %1338 = vmatpush.msra.mxu3 %v410_v40 }
 0x1fb   : > { %v1046_v29 = vmul.f32 %v2052_v57, %v1045_v55  ;;  %v863_v31 = vmax.f32 %v861_v32, %v862_v20 }
 0x1fd   : > { %v1047_v36 = vadd.f32 %v2052_v57, %v1046_v29  ;;  %v864_v61 = vrot.slane %v863_v31, 2  ;;  %v2734_v38 = vpop.f32.mrf.mxu1 }
 0x1ff   : > { %v1051_v9 = vsel %vm1050_vm4, %v2052_v57, %v1047_v36  ;;  %v865_v46 = vmax.f32 %v863_v31, %v864_v61 }
 0x200   : > { %v1056_v44 = vsel %vm1053_vm5, %v1055_v5, %v1051_v9 }
 0x201   : > { %v1132_v47 = vmul.f32 %v2048_v25, %v1056_v44  ;;  %v1131_v4 = vmul.f32 %v2698_v35, %v1056_v44  ;;  %v972_v25 = vadd.f32 %v971_v42, %v970_v49  ;;  %v866_v59 = vrot.slane %v865_v46, 1 }
 0x203   : > { %1922 = vmatpush.xpose.msk.msra.mxu1 %vm422_vm1, %v1132_v47  ;;  %v973_v6 = vrot.slane %v972_v25, 4  ;;  %v867_v0 = vmax.f32 %v865_v46, %v866_v59 }
 0x205   : > { %v974_v45 = vadd.f32 %v973_v6, %v972_v25  ;;  %v903_v36 = vsub.f32 %v2722_v13, %v867_v0  ;;  %v904_v28 = vsub.f32 %v336_v53, %v867_v0  ;;  %v868_v53 = vsel %vm422_vm1, %v2734_v38, -inf }
 0x207   : > { %1923 = vmatpush.xpose.msk.msra.mxu1 %vm422_vm1, %v1131_v4  ;;  %v975_v35 = vrot.slane %v974_v45, 2  ;;  %v927_v4 = vmul.f32 1.442695, %v903_v36  ;;  %v929_v60 = vmul.f32 1.442695, %v904_v28 }
 0x209   : > { %v976_v15 = vadd.f32 %v975_v35, %v974_v45  ;;  %v2759_v35 = vpop.f32.mrf.mxu1 }
 0x20a   : > { %v869_v32 = vsel %vm422_vm1, %v2759_v35, -inf }
 0x20b   : > { %v977_v24 = vrot.slane %v976_v15, 1 }
 0x20d   : > { %v978_v19 = vadd.f32 %v977_v24, %v976_v15  ;;  %v416_v24 = vpop.f32.mrf.mxu2 }
 0x20f   : > { %v1068_v58 = vand.u32 2147483648, %v978_v19  ;;  %vm1062_vm6 = vweird.f32 %v978_v19  ;;  %v1066_v51 = vand.u32 2147483647, %v978_v19 }
 0x211   : > { %v1069_v33 = vor.u32 1.1754944e-38, %v1068_v58  ;;  %vm1067_vm11 = vcmp.eq.f32.partialorder %v1066_v51, 8.507059e+37 }
 0x215   : > { %v548_v16 = vpop.xlane.xlu1 %547 }
 0x216   : > { %2057 = vrcp.f32 %v548_v16  ;;  %v702_v23 = vand.u32 2147483647, %v548_v16  ;;  %v704_v21 = vand.u32 2147483648, %v548_v16  ;;  %vm698_vm8 = vweird.f32 %v548_v16 }
 0x217   : > { %2059 = vrcp.f32 %v978_v19 }
 0x218   : > { %v705_v29 = vor.u32 1.1754944e-38, %v704_v21  ;;  %vm703_vm12 = vcmp.eq.f32.partialorder %v702_v23, 8.507059e+37 }
 0x21c   : > { %v2058_v26 = vpop.eup %2057 }
 0x21d   : > { %v694_v63 = vmul.f32 %v2058_v26, %v548_v16  ;;  %v2731_v1 = vpop.xlane.xlu2 %550  ;;  %v2060_v8 = vpop.eup %2059  ;;  %vm699_vm3 = vweird.f32 %v2058_v26 }
 0x21e   : > { %2061 = vrcp.f32 %v2731_v1  ;;  %v1058_v14 = vmul.f32 %v2060_v8, %v978_v19  ;;  %vm1063_vm7 = vweird.f32 %v2060_v8  ;;  %vm2736_vm9 = vmor %vm698_vm8, %vm699_vm3  ;;  %v716_v42 = vand.u32 2147483647, %v2731_v1 }
 0x21f   : > { %v695_v62 = vsub.f32 1.0, %v694_v63  ;;  %vm2740_vm10 = vmor %vm1062_vm6, %vm1063_vm7  ;;  %v718_v13 = vand.u32 2147483648, %v2731_v1  ;;  %vm712_vm14 = vweird.f32 %v2731_v1  ;;  %v870_v19 = vmax.f32 %v868_v53, %v869_v32 }
 0x220   : > { %v1059_v57 = vsub.f32 1.0, %v1058_v14  ;;  %vm717_vm0 = vcmp.eq.f32.partialorder %v716_v42, 8.507059e+37 }
 0x221   : > { %v696_v17 = vmul.f32 %v2058_v26, %v695_v62  ;;  %v719_v16 = vor.u32 1.1754944e-38, %v718_v13  ;;  %v871_v61 = vrot.slane %v870_v19, 4 }
 0x222   : > { %v1060_v7 = vmul.f32 %v2060_v8, %v1059_v57  ;;  %v2787_v57 = vpop.f32.mrf.mxu1 }
 0x223   : > { %v697_v54 = vadd.f32 %v2058_v26, %v696_v17  ;;  %v872_v14 = vmax.f32 %v870_v19, %v871_v61 }
 0x224   : > { %v2062_v55 = vpop.eup %2061  ;;  %v1061_v11 = vadd.f32 %v2060_v8, %v1060_v7 }
 0x225   : > { %v708_v5 = vmul.f32 %v2062_v55, %v2731_v1  ;;  %v2746_v9 = vpop.xlane.xlu0 %553  ;;  %v701_v44 = vsel %vm2736_vm9, %v2058_v26, %v697_v54  ;;  %vm713_vm13 = vweird.f32 %v2062_v55  ;;  %v873_v51 = vrot.slane %v872_v14, 2 }
 0x226   : > { %2063 = vrcp.f32 %v2746_v9  ;;  %v1065_v49 = vsel %vm2740_vm10, %v2060_v8, %v1061_v11  ;;  %v2757_v45 = vpop.f32.mrf.mxu3  ;;  %v706_v18 = vsel %vm703_vm12, %v705_v29, %v701_v44  ;;  %vm714_vm15 = vmor %vm712_vm14, %vm713_vm13  ;;  %v732_v21 = vand.u32 2147483648, %v2746_v9  ;;  %v419_v29 = vpop.f32.mrf.mxu2 }
 0x227   : > { %v709_v47 = vsub.f32 1.0, %v708_v5  ;;  %v2755_v25 = vsel %vm1067_vm11, %v1069_v33, %v1065_v49  ;;  %2065 = vpow2.f32 %v927_v4  ;;  %v800_v50 = vmul.f32 0.015625, %v706_v18 }
 0x228   : > { %v1134_v22 = vmul.f32 %v2715_v2, %v2755_v25  ;;  %2067 = vpow2.f32 %v929_v60  ;;  %vm726_vm4 = vweird.f32 %v2746_v9  ;;  %v733_v7 = vor.u32 1.1754944e-38, %v732_v21 }
 0x229   : > { %v710_v6 = vmul.f32 %v2062_v55, %v709_v47  ;;  %v816_v40 = vmul.f32 %v2442_v39, %v800_v50  ;;  %v730_v39 = vand.u32 2147483647, %v2746_v9  ;;  %v874_v41 = vmax.f32 %v872_v14, %v873_v51 }
 0x22a   : > { %1926 = vmatpush.xpose.msk.msrb.mxu2 %vm422_vm1, %v1134_v22  ;;  %v2798_v42 = vpop.f32.mrf.mxu1 }
 0x22b   : > { %v711_v15 = vadd.f32 %v2062_v55, %v710_v6  ;;  %1907 = vmatmul.msk.f32.gmra.mxu3 %vm422_vm1, %v816_v40  ;;  %vm731_vm3 = vcmp.eq.f32.partialorder %v730_v39, 8.507059e+37  ;;  %v875_v5 = vrot.slane %v874_v41, 1 }
 0x22c   : > { %v2064_v20 = vpop.eup %2063 }
 0x22d   : > { %v715_v2 = vsel %vm714_vm15, %v2062_v55, %v711_v15  ;;  %v722_v26 = vmul.f32 %v2064_v20, %v2746_v9  ;;  %v2772_v63 = vpop.eup %2065  ;;  %v2783_v37 = vpop.xlane.xlu1 %556  ;;  %vm727_vm2 = vweird.f32 %v2064_v20  ;;  %v876_v47 = vmax.f32 %v874_v41, %v875_v5 }
 0x22e   : > { %v720_v31 = vsel %vm717_vm0, %v719_v16, %v715_v2  ;;  %v2775_v8 = vpop.eup %2067  ;;  %v979_v62 = vsel %vm422_vm1, %v2772_v63, 0.0  ;;  %v1195_v58 = vpop.f32.mrf.mxu3  ;;  %2069 = vrcp.f32 %v2783_v37  ;;  %vm728_vm5 = vmor %vm726_vm4, %vm727_vm2  ;;  %v744_v49 = vand.u32 2147483647, %v2783_v37 }
 0x22f   : > { %v801_v1 = vmul.f32 0.015625, %v720_v31  ;;  %v723_v46 = vsub.f32 1.0, %v722_v26  ;;  %v980_v23 = vsel %vm422_vm1, %v2775_v8, 0.0  ;;  %1920 = vmatmul.msk.f32.vlgmr.msrb.gmra.mxu0 %vm422_vm1, %v1195_v58  ;;  %v746_v6 = vand.u32 2147483648, %v2783_v37 }
 0x230   : > { %v981_v17 = vadd.f32 %v980_v23, %v979_v62  ;;  %v905_v18 = vsub.f32 %v2734_v38, %v876_v47  ;;  %v906_v22 = vsub.f32 %v2759_v35, %v876_v47  ;;  %v877_v15 = vsel %vm422_vm1, %v2787_v57, -inf }
 0x231   : > { %v724_v59 = vmul.f32 %v2064_v20, %v723_v46  ;;  %v817_v0 = vmul.f32 %v2453_v56, %v801_v1  ;;  %v1133_v38 = vmul.f32 %v2713_v43, %v2755_v25  ;;  %vm740_vm7 = vweird.f32 %v2783_v37 }
 0x232   : > { %v982_v54 = vrot.slane %v981_v17, 4  ;;  %v931_v16 = vmul.f32 1.442695, %v905_v18  ;;  %v933_v19 = vmul.f32 1.442695, %v906_v22  ;;  %vm745_vm9 = vcmp.eq.f32.partialorder %v744_v49, 8.507059e+37  ;;  %v2821_v61 = vpop.f32.mrf.mxu1 }
 0x233   : > { %v725_v55 = vadd.f32 %v2064_v20, %v724_v59  ;;  %1908 = vmatmul.msk.f32.vlgmr.msrb.gmra.mxu3 %vm422_vm1, %v817_v0  ;;  %1927 = vmatpush.xpose.msk.msrb.mxu2 %vm422_vm1, %v1133_v38 }
 0x234   : > { %v983_v10 = vadd.f32 %v982_v54, %v981_v17  ;;  %v2070_v28 = vpop.eup %2069  ;;  %1366 = vmatpush.msrb.mxu3 %v419_v29 }
 0x235   : > { %v729_v33 = vsel %vm728_vm5, %v2064_v20, %v725_v55  ;;  %v736_v9 = vmul.f32 %v2070_v28, %v2783_v37  ;;  %vm741_vm6 = vweird.f32 %v2070_v28 }
 0x236   : > { %v734_v36 = vsel %vm731_vm3, %v733_v7, %v729_v33  ;;  %v984_v11 = vrot.slane %v983_v10, 2  ;;  %v2792_v44 = vpop.xlane.xlu2 %559  ;;  %v1198_v4 = vpop.f32.mrf.mxu3  ;;  %1367 = vmatpush.msrb.mxu3 %v416_v24  ;;  %v878_v24 = vsel %vm422_vm1, %v2798_v42, -inf  ;;  %vm742_vm8 = vmor %vm740_vm7, %vm741_vm6 }
 0x237   : > { %v802_v56 = vmul.f32 0.015625, %v734_v36  ;;  %2071 = vrcp.f32 %v2792_v44  ;;  %1921 = vmatmul.msk.f32.gmra.mxu0 %vm422_vm1, %v1198_v4  ;;  %v737_v13 = vsub.f32 1.0, %v736_v9  ;;  %v879_v31 = vmax.f32 %v877_v15, %v878_v24 }
 0x238   : > { %v985_v60 = vadd.f32 %v984_v11, %v983_v10  ;;  %2073 = vpow2.f32 %v931_v16  ;;  %v758_v46 = vand.u32 2147483647, %v2792_v44  ;;  %v760_v14 = vand.u32 2147483648, %v2792_v44 }
 0x239   : > { %v818_v50 = vmul.f32 %v2481_v34, %v802_v56  ;;  %v738_v32 = vmul.f32 %v2070_v28, %v737_v13  ;;  %v747_v34 = vor.u32 1.1754944e-38, %v746_v6  ;;  %v880_v39 = vrot.slane %v879_v31, 4 }
 0x23a   : > { %v986_v53 = vrot.slane %v985_v60, 1  ;;  %vm754_vm10 = vweird.f32 %v2792_v44  ;;  %vm2839_vm12 = vcmp.eq.f32.partialorder %v758_v46, 8.507059e+37  ;;  %v2865_v18 = vpop.f32.mrf.mxu1  ;;  %v886_v24 = vsel %vm422_vm1, %v2821_v61, -inf }
 0x23b   : > { %v739_v35 = vadd.f32 %v2070_v28, %v738_v32  ;;  %1909 = vmatmul.msk.f32.gmra.mxu3 %vm422_vm1, %v818_v50  ;;  %v881_v0 = vmax.f32 %v879_v31, %v880_v39 }
 0x23c   : > { %v2808_v20 = vadd.f32 %v986_v53, %v985_v60 }
 0x23d   : > { %v2072_v2 = vpop.eup %2071  ;;  %v743_v26 = vsel %vm742_vm8, %v2070_v28, %v739_v35  ;;  %v882_v5 = vrot.slane %v881_v0, 2 }
 0x23e   : > { %2075 = vrcp.f32 %v2808_v20  ;;  %v2816_v40 = vpop.xlane.xlu0 %562  ;;  %v750_v43 = vmul.f32 %v2072_v2, %v2792_v44  ;;  %v748_v25 = vsel %vm745_vm9, %v747_v34, %v743_v26  ;;  %v2825_v21 = vpop.eup %2073  ;;  %v1080_v37 = vand.u32 2147483647, %v2808_v20 }
 0x23f   : > { %2077 = vpow2.f32 %v933_v19  ;;  %v803_v1 = vmul.f32 0.015625, %v748_v25  ;;  %v988_v51 = vsel %vm422_vm1, %v2825_v21, 0.0  ;;  %vm755_vm11 = vweird.f32 %v2072_v2 }
 0x240   : > { %2079 = vrcp.f32 %v2816_v40  ;;  %v751_v62 = vsub.f32 1.0, %v750_v43  ;;  %vm1076_vm13 = vweird.f32 %v2808_v20  ;;  %v1082_v10 = vand.u32 2147483648, %v2808_v20  ;;  %vm756_vm15 = vmor %vm754_vm10, %vm755_vm11 }
 0x241   : > { %v1224_v23 = vpop.f32.mrf.mxu3  ;;  %v819_v17 = vmul.f32 %v2517_v3, %v803_v1  ;;  %v761_v3 = vor.u32 1.1754944e-38, %v760_v14  ;;  %vm2850_vm14 = vcmp.eq.f32.partialorder %v1080_v37, 8.507059e+37  ;;  %v772_v9 = vand.u32 2147483647, %v2816_v40 }
 0x242   : > { %v752_v58 = vmul.f32 %v2072_v2, %v751_v62  ;;  %1924 = vmatmul.msk.f32.vlgmr.msra.gmra.mxu1 %vm422_vm1, %v1224_v23  ;;  %v883_v47 = vmax.f32 %v881_v0, %v882_v5  ;;  %v1083_v44 = vor.u32 1.1754944e-38, %v1082_v10  ;;  %v774_v22 = vand.u32 2147483648, %v2816_v40 }
 0x243   : > { %1910 = vmatmul.msk.f32.vlgmr.msra.gmra.mxu3 %vm422_vm1, %v819_v17  ;;  %vm768_vm5 = vweird.f32 %v2816_v40  ;;  %vm773_vm3 = vcmp.eq.f32.partialorder %v772_v9, 8.507059e+37 }
 0x244   : > { %v2830_v59 = vpop.eup %2075  ;;  %v753_v7 = vadd.f32 %v2072_v2, %v752_v58  ;;  %1914 = vmatpush.xpose.msk.msra.mxu3 %vm422_vm1, %v2648_v48  ;;  %v884_v53 = vrot.slane %v883_v47, 1  ;;  %v775_v34 = vor.u32 1.1754944e-38, %v774_v22 }
 0x245   : > { %v2835_v54 = vpop.eup %2077  ;;  %v1072_v55 = vmul.f32 %v2830_v59, %v2808_v20  ;;  %vm1077_vm0 = vweird.f32 %v2830_v59 }
 0x246   : > { %v2080_v29 = vpop.eup %2079  ;;  %v989_v33 = vsel %vm422_vm1, %v2835_v54, 0.0  ;;  %v757_v4 = vsel %vm756_vm15, %v2072_v2, %v753_v7  ;;  %vm2876_vm4 = vmor %vm1076_vm13, %vm1077_vm0  ;;  %v885_v19 = vmax.f32 %v883_v47, %v884_v53 }
 0x247   : > { %v1073_v36 = vsub.f32 1.0, %v1072_v55  ;;  %v990_v11 = vadd.f32 %v989_v33, %v988_v51  ;;  %v764_v56 = vmul.f32 %v2080_v29, %v2816_v40  ;;  %v762_v6 = vsel %vm2839_vm12, %v761_v3, %v757_v4 }
 0x248   : > { %v2861_v13 = vpop.xlane.xlu1 %565  ;;  %1915 = vmatpush.xpose.msk.msra.mxu3 %vm422_vm1, %v2729_v52  ;;  %vm769_vm2 = vweird.f32 %v2080_v29  ;;  %v804_v38 = vmul.f32 0.015625, %v762_v6  ;;  %v887_v52 = vsel %vm422_vm1, %v2865_v18, -inf  ;;  %v907_v20 = vsub.f32 %v2787_v57, %v885_v19 }
 0x249   : > { %v1074_v48 = vmul.f32 %v2830_v59, %v1073_v36  ;;  %v991_v60 = vrot.slane %v990_v11, 4  ;;  %v765_v49 = vsub.f32 1.0, %v764_v56  ;;  %2081 = vrcp.f32 %v2861_v13  ;;  %vm770_vm6 = vmor %vm768_vm5, %vm769_vm2 }
 0x24a   : > { %v908_v31 = vsub.f32 %v2798_v42, %v885_v19  ;;  %v820_v26 = vmul.f32 %v2559_v12, %v804_v38  ;;  %v888_v62 = vmax.f32 %v886_v24, %v887_v52  ;;  %v935_v23 = vmul.f32 1.442695, %v907_v20 }
 0x24b   : > { %v1075_v15 = vadd.f32 %v2830_v59, %v1074_v48  ;;  %v992_v50 = vadd.f32 %v991_v60, %v990_v11  ;;  %v766_v32 = vmul.f32 %v2080_v29, %v765_v49  ;;  %v788_v7 = vand.u32 2147483648, %v2861_v13 }
 0x24c   : > { %v937_v40 = vmul.f32 1.442695, %v908_v31  ;;  %1911 = vmatmul.msk.f32.gmra.mxu3 %vm422_vm1, %v820_v26  ;;  %2083 = vpow2.f32 %v935_v23  ;;  %v889_v58 = vrot.slane %v888_v62, 4  ;;  %v786_v3 = vand.u32 2147483647, %v2861_v13 }
 0x24d   : > { %v993_v2 = vrot.slane %v992_v50, 2  ;;  %v767_v35 = vadd.f32 %v2080_v29, %v766_v32  ;;  %v1079_v43 = vsel %vm2876_vm4, %v2830_v59, %v1075_v15  ;;  %vm782_vm8 = vweird.f32 %v2861_v13 }
 0x24e   : > { %v1084_v12 = vsel %vm2850_vm14, %v1083_v44, %v1079_v43  ;;  %2085 = vpow2.f32 %v937_v40  ;;  %v890_v0 = vmax.f32 %v888_v62, %v889_v58  ;;  %v789_v28 = vor.u32 1.1754944e-38, %v788_v7 }
 0x24f   : > { %v994_v25 = vadd.f32 %v993_v2, %v992_v50  ;;  %v771_v1 = vsel %vm770_vm6, %v2080_v29, %v767_v35  ;;  %v2082_v46 = vpop.eup %2081  ;;  %v1136_v55 = vmul.f32 %v2775_v8, %v1084_v12  ;;  %v1135_v11 = vmul.f32 %v2772_v63, %v1084_v12 }
 0x250   : > { %v776_v14 = vsel %vm773_vm3, %v775_v34, %v771_v1  ;;  %v778_v42 = vmul.f32 %v2082_v46, %v2861_v13  ;;  %vm783_vm7 = vweird.f32 %v2082_v46  ;;  %v891_v29 = vrot.slane %v890_v0, 2 }
 0x251   : > { %v1227_v39 = vpop.f32.mrf.mxu3  ;;  %v995_v37 = vrot.slane %v994_v25, 1  ;;  %v805_v57 = vmul.f32 0.015625, %v776_v14  ;;  %vm784_vm9 = vmor %vm782_vm8, %vm783_vm7  ;;  %vm787_vm10 = vcmp.eq.f32.partialorder %v786_v3, 8.507059e+37  ;;  %v1166_v43 = vpop.f32.mrf.mxu2 }
 0x252   : > { %1925 = vmatmul.msk.f32.gmra.mxu1 %vm422_vm1, %v1227_v39  ;;  %v779_v59 = vsub.f32 1.0, %v778_v42  ;;  %v2900_v10 = vpop.eup %2083  ;;  %v892_v36 = vmax.f32 %v890_v0, %v891_v29 }
 0x253   : > { %v996_v17 = vadd.f32 %v995_v37, %v994_v25  ;;  %v821_v51 = vmul.f32 %v2637_v27, %v805_v57  ;;  %v997_v8 = vsel %vm422_vm1, %v2900_v10, 0.0 }
 0x254   : > { %v780_v41 = vmul.f32 %v2082_v46, %v779_v59  ;;  %v2904_v27 = vpop.eup %2085  ;;  %v893_v9 = vrot.slane %v892_v36, 1 }
 0x255   : > { %2087 = vrcp.f32 %v996_v17  ;;  %1912 = vmatmul.msk.f32.vlgmr.msrb.gmra.mxu3 %vm422_vm1, %v821_v51  ;;  %v998_v56 = vsel %vm422_vm1, %v2904_v27, 0.0  ;;  %vm1090_vm11 = vweird.f32 %v996_v17  ;;  %v1094_v44 = vand.u32 2147483647, %v996_v17 }
 0x256   : > { %v781_v33 = vadd.f32 %v2082_v46, %v780_v41  ;;  %1930 = vmatpush.xpose.msk.msrb.mxu3 %vm422_vm1, %v1136_v55  ;;  %v999_v48 = vadd.f32 %v998_v56, %v997_v8  ;;  %v894_v13 = vmax.f32 %v892_v36, %v893_v9  ;;  %v1096_v22 = vand.u32 2147483648, %v996_v17 }
 0x257   : > { %vm1095_vm14 = vcmp.eq.f32.partialorder %v1094_v44, 8.507059e+37  ;;  %v175_v44 = vld [vmem:[%s3012_s1 + $0x60] sm:$0xff] }
 0x258   : > { %v785_v47 = vsel %vm784_vm9, %v2082_v46, %v781_v33  ;;  %v1000_v53 = vrot.slane %v999_v48, 4  ;;  %v909_v15 = vsub.f32 %v2821_v61, %v894_v13  ;;  %v910_v50 = vsub.f32 %v2865_v18, %v894_v13  ;;  %v176_v13 = vld [vmem:[%s3012_s1 + $0x68] sm:$0xff] }
 0x259   : > { %v1253_v5 = vpop.f32.mrf.mxu3  ;;  %v790_v60 = vsel %vm787_vm10, %v789_v28, %v785_v47  ;;  %v1097_v2 = vor.u32 1.1754944e-38, %v1096_v22 }
 0x25a   : > { %1928 = vmatmul.msk.f32.vlgmr.msrb.gmra.mxu2 %vm422_vm1, %v1253_v5  ;;  %v806_v6 = vmul.f32 0.015625, %v790_v60  ;;  %1931 = vmatpush.xpose.msk.msrb.mxu3 %vm422_vm1, %v1135_v11  ;;  %v1001_v16 = vadd.f32 %v1000_v53, %v999_v48  ;;  %v939_v24 = vmul.f32 1.442695, %v909_v15  ;;  %v941_v38 = vmul.f32 1.442695, %v910_v50 }
 0x25b   : > { %v2088_v4 = vpop.eup %2087 }
 0x25c   : > { %v1086_v49 = vmul.f32 %v2088_v4, %v996_v17  ;;  %vm1091_vm12 = vweird.f32 %v2088_v4  ;;  %v822_v32 = vmul.f32 %v2685_v30, %v806_v6  ;;  %v1002_v35 = vrot.slane %v1001_v16, 2 }
 0x25d   : > { %vm1092_vm13 = vmor %vm1090_vm11, %vm1091_vm12  ;;  %2089 = vpow2.f32 %v939_v24 }
 0x25e   : > { %v1087_v63 = vsub.f32 1.0, %v1086_v49  ;;  %1913 = vmatmul.msk.f32.gmra.mxu3 %vm422_vm1, %v822_v32  ;;  %v1003_v61 = vadd.f32 %v1002_v35, %v1001_v16  ;;  %2091 = vpow2.f32 %v941_v38 }
 0x260   : > { %v1088_v19 = vmul.f32 %v2088_v4, %v1087_v63  ;;  %v1004_v20 = vrot.slane %v1003_v61, 1 }
 0x261   : > { %v1256_v52 = vpop.f32.mrf.mxu3 }
 0x262   : > { %1929 = vmatmul.msk.f32.gmra.mxu2 %vm422_vm1, %v1256_v52  ;;  %v1089_v34 = vadd.f32 %v2088_v4, %v1088_v19  ;;  %v1005_v26 = vadd.f32 %v1004_v20, %v1003_v61 }
 0x263   : > { %v2090_v25 = vpop.eup %2089 }
 0x264   : > { %v1093_v30 = vsel %vm1092_vm13, %v2088_v4, %v1089_v34  ;;  %v2092_v62 = vpop.eup %2091  ;;  %2093 = vrcp.f32 %v1005_v26  ;;  %v1006_v46 = vsel %vm422_vm1, %v2090_v25, 0.0  ;;  %v1110_v57 = vand.u32 2147483648, %v1005_v26 }
 0x265   : > { %v1098_v18 = vsel %vm1095_vm14, %v1097_v2, %v1093_v30  ;;  %v1007_v14 = vsel %vm422_vm1, %v2092_v62, 0.0  ;;  %vm1104_vm15 = vweird.f32 %v1005_v26 }
 0x266   : > { %v1138_v31 = vmul.f32 %v2835_v54, %v1098_v18  ;;  %1916 = vmatmul.msk.f32.vlgmr.msra.gmra.mxu3 %vm422_vm1, %v1166_v43  ;;  %v1137_v1 = vmul.f32 %v2825_v21, %v1098_v18  ;;  %v1008_v23 = vadd.f32 %v1007_v14, %v1006_v46  ;;  %v1108_v21 = vand.u32 2147483647, %v1005_v26 }
 0x267   : > { %v1111_v59 = vor.u32 1.1754944e-38, %v1110_v57  ;;  %1974 = vmatpush.msra.mxu3 %v176_v13 }
 0x268   : > { %1934 = vmatpush.xpose.msk.msra.mxu0 %vm422_vm1, %v1138_v31  ;;  %v1009_v40 = vrot.slane %v1008_v23, 4  ;;  %vm1109_vm4 = vcmp.eq.f32.partialorder %v1108_v21, 8.507059e+37  ;;  %v1984_v31 = vld [vmem:[%s3012_s1 + $0x70] ss:$0 sm:$0xff] }
 0x269   : > { %v1282_v7 = vpop.f32.mrf.mxu3  ;;  %1975 = vmatpush.msra.mxu3 %v175_v44 }
 0x26a   : > { %v2094_v54 = vpop.eup %2093  ;;  %v1010_v39 = vadd.f32 %v1009_v40, %v1008_v23 }
 0x26b   : > { %v1100_v37 = vmul.f32 %v2094_v54, %v1005_v26  ;;  %vm1105_vm0 = vweird.f32 %v2094_v54 }
 0x26c   : > { %1935 = vmatpush.xpose.msk.msra.mxu0 %vm422_vm1, %v1137_v1  ;;  %v1011_v42 = vrot.slane %v1010_v39, 2  ;;  %vm1106_vm2 = vmor %vm1104_vm15, %vm1105_vm0 }
 0x26d   : > { %v1101_v12 = vsub.f32 1.0, %v1100_v37 }
 0x26e   : > { %1917 = vmatmul.msk.f32.gmra.mxu3 %vm422_vm1, %v2757_v45  ;;  %v1012_v58 = vadd.f32 %v1011_v42, %v1010_v39 }
 0x26f   : > { %v1102_v17 = vmul.f32 %v2094_v54, %v1101_v12 }
 0x270   : > { %v1013_v51 = vrot.slane %v1012_v58, 1  ;;  %1718 = vmatpush.msrb.mxu0 %v176_v13 }
 0x271   : > { %v1103_v0 = vadd.f32 %v2094_v54, %v1102_v17 }
 0x272   : > { %v1014_v55 = vadd.f32 %v1013_v51, %v1012_v58  ;;  %1719 = vmatpush.msrb.mxu0 %v175_v44 }
 0x273   : > { %v1107_v41 = vsel %vm1106_vm2, %v2094_v54, %v1103_v0 }
 0x274   : > { %v1112_v3 = vsel %vm1109_vm4, %v1111_v59, %v1107_v41  ;;  %2095 = vrcp.f32 %v1014_v55  ;;  %v1124_v36 = vand.u32 2147483648, %v1014_v55  ;;  %vm1118_vm5 = vweird.f32 %v1014_v55 }
 0x275   : > { %v1140_v45 = vmul.f32 %v2904_v27, %v1112_v3  ;;  %v1139_v29 = vmul.f32 %v2900_v10, %v1112_v3  ;;  %v1122_v28 = vand.u32 2147483647, %v1014_v55 }
 0x276   : > { %1932 = vmatmul.msk.f32.vlgmr.msrb.gmra.mxu3 %vm422_vm1, %v1282_v7  ;;  %v1125_v56 = vor.u32 1.1754944e-38, %v1124_v36 }
 0x277   : > { %1938 = vmatpush.xpose.msk.msrb.mxu1 %vm422_vm1, %v1140_v45  ;;  %vm1123_vm7 = vcmp.eq.f32.partialorder %v1122_v28, 8.507059e+37 }
 0x27a   : > { %v2096_v33 = vpop.eup %2095 }
 0x27b   : > { %v1114_v5 = vmul.f32 %v2096_v33, %v1014_v55  ;;  %1939 = vmatpush.xpose.msk.msrb.mxu1 %vm422_vm1, %v1139_v29  ;;  %vm1119_vm3 = vweird.f32 %v2096_v33 }
 0x27c   : > { %vm1120_vm6 = vmor %vm1118_vm5, %vm1119_vm3 }
 0x27d   : > { %v1115_v8 = vsub.f32 1.0, %v1114_v5 }
 0x27f   : > { %v1116_v11 = vmul.f32 %v2096_v33, %v1115_v8 }
 0x281   : > { %v1117_v9 = vadd.f32 %v2096_v33, %v1116_v11 }
 0x283   : > { %v1121_v47 = vsel %vm1120_vm6, %v2096_v33, %v1117_v9 }
 0x284   : > { %v1126_v27 = vsel %vm1123_vm7, %v1125_v56, %v1121_v47 }
 0x285   : > { %v1142_v4 = vmul.f32 %v2092_v62, %v1126_v27  ;;  %v1141_v10 = vmul.f32 %v2090_v25, %v1126_v27 }
 0x287   : > { %1942 = vmatpush.xpose.msk.msra.mxu2 %vm422_vm1, %v1142_v4 }
 0x28b   : > { %1943 = vmatpush.xpose.msk.msra.mxu2 %vm422_vm1, %v1141_v10 }
 0x2ac   : > { %v1439_v32 = vpop.f32.mrf.mxu0 }
 0x2ae   : > { %v1285_v48 = vpop.f32.mrf.mxu3 }
 0x2af   : > { %1933 = vmatmul.msk.f32.gmra.mxu3 %vm422_vm1, %v1285_v48 }
 0x2b4   : > { %v1442_v16 = vpop.f32.mrf.mxu0 }
 0x2b6   : > { %v1311_v60 = vpop.f32.mrf.mxu3 }
 0x2b7   : > { %1936 = vmatmul.msk.f32.vlgmr.msra.gmra.mxu0 %vm422_vm1, %v1311_v60 }
 0x2be   : > { %v1314_v49 = vpop.f32.mrf.mxu3 }
 0x2bf   : > { %1937 = vmatmul.msk.f32.gmra.mxu0 %vm422_vm1, %v1314_v49  ;;  %v1474_v19 = vpop.f32.mrf.mxu1 }
 0x2c6   : > { %v1340_v6 = vpop.f32.mrf.mxu3 }
 0x2c7   : > { %1940 = vmatmul.msk.f32.vlgmr.msrb.gmra.mxu1 %vm422_vm1, %v1340_v6 }
 0x2cf   : > { %v1343_v22 = vpop.f32.mrf.mxu3  ;;  %v1477_v24 = vpop.f32.mrf.mxu1 }
 0x2d0   : > { %1941 = vmatmul.msk.f32.gmra.mxu1 %vm422_vm1, %v1343_v22 }
 0x2d8   : > { %v1369_v53 = vpop.f32.mrf.mxu3 }
 0x2d9   : > { %1944 = vmatmul.msk.f32.vlgmr.msra.gmra.mxu2 %vm422_vm1, %v1369_v53 }
 0x2dd   : > { %v1509_v38 = vpop.f32.mrf.mxu2 }
 0x2e1   : > { %v1372_v63 = vpop.f32.mrf.mxu3 }
 0x2e2   : > { %1945 = vmatmul.msk.f32.gmra.mxu2 %vm422_vm1, %v1372_v63 }
 0x2e5   : > { %v1512_v52 = vpop.f32.mrf.mxu2 }
 0x2e9   : > { %v1404_v15 = vpop.f32.mrf.mxu3 }
 0x2ea   : > { %1946 = vmatmul.msk.f32.vlgmr.msrb.gmra.mxu0 %vm422_vm1, %v1404_v15 }
 0x2f1   : > { %v1407_v50 = vpop.f32.mrf.mxu3 }
 0x2f2   : > { %1947 = vmatmul.msk.f32.gmra.mxu0 %vm422_vm1, %v1407_v50 }
 0x2f9   : > { %v1544_v2 = vpop.f32.mrf.mxu3 }
 0x2fa   : > { %1948 = vmatmul.msk.f32.gmra.mxu0 %vm422_vm1, %v1439_v32 }
 0x302   : > { %1949 = vmatmul.msk.f32.gmra.mxu0 %vm422_vm1, %v1442_v16 }
 0x30a   : > { %1950 = vmatmul.msk.f32.gmra.mxu0 %vm422_vm1, %v1474_v19 }
 0x312   : > { %1951 = vmatmul.msk.f32.gmra.mxu0 %vm422_vm1, %v1477_v24 }
 0x31a   : > { %1952 = vmatmul.msk.f32.gmra.mxu0 %vm422_vm1, %v1509_v38 }
 0x322   : > { %1953 = vmatmul.msk.f32.gmra.mxu0 %vm422_vm1, %v1512_v52 }
 0x32a   : > { %1954 = vmatmul.msk.f32.gmra.mxu0 %vm422_vm1, %v1544_v2 }
 0x332   : > { %v1547_v35 = vpop.f32.mrf.mxu3 }
 0x333   : > { %1955 = vmatmul.msk.f32.gmra.mxu0 %vm422_vm1, %v1547_v35 }
 0x334   : > { %v1579_v34 = vpop.f32.mrf.mxu0 }
 0x33b   : > { %1956 = vmatmul.msk.f32.gmra.mxu0 %vm422_vm1, %v1579_v34 }
 0x33c   : > { %v1582_v61 = vpop.f32.mrf.mxu0 }
 0x33d   : > { %1957 = vmatmul.msk.f32.vlgmr.msra.gmra.mxu3 %vm422_vm1, %v1582_v61 }
 0x344   : > { %v1614_v30 = vpop.f32.mrf.mxu1 }
 0x345   : > { %1958 = vmatmul.msk.f32.gmra.mxu3 %vm422_vm1, %v1614_v30 }
 0x34d   : > { %v1617_v18 = vpop.f32.mrf.mxu1 }
 0x34e   : > { %1959 = vmatmul.msk.f32.gmra.mxu3 %vm422_vm1, %v1617_v18 }
 0x35c   : > { %v1649_v20 = vpop.f32.mrf.mxu2 }
 0x35d   : > { %1960 = vmatmul.msk.f32.gmra.mxu3 %vm422_vm1, %v1649_v20 }
 0x365   : > { %v1652_v26 = vpop.f32.mrf.mxu2 }
 0x366   : > { %1961 = vmatmul.msk.f32.gmra.mxu3 %vm422_vm1, %v1652_v26 }
 0x367   : > { %v1721_v43 = vpop.f32.mrf.mxu0 }
 0x368   : > { %v1722_v25 = vadd.f32 %v1984_v31, %v1721_v43 }
 0x36a   : > { %1769 = vst.msk [vmem:[%s2974_s23] sm:$0xff] %vm422_vm1, %v1722_v25 }
 0x36f   : > { %v1724_v1 = vpop.f32.mrf.mxu0 }
 0x370   : > { %v1725_v62 = vadd.f32 %v1984_v31, %v1724_v1 }
 0x372   : > { %1770 = vst.msk [vmem:[%s2974_s23 + $0x8] sm:$0xff] %vm422_vm1, %v1725_v62 }
 0x377   : > { %v1727_v46 = vpop.f32.mrf.mxu0 }
 0x378   : > { %v1728_v14 = vadd.f32 %v1984_v31, %v1727_v46 }
 0x37a   : > { %1771 = vst.msk [vmem:[%s2974_s23 + $0x10] sm:$0xff] %vm422_vm1, %v1728_v14 }
 0x37f   : > { %v1730_v23 = vpop.f32.mrf.mxu0 }
 0x380   : > { %v1731_v40 = vadd.f32 %v1984_v31, %v1730_v23 }
 0x382   : > { %1772 = vst.msk [vmem:[%s2974_s23 + $0x18] sm:$0xff] %vm422_vm1, %v1731_v40 }
 0x387   : > { %v1733_v54 = vpop.f32.mrf.mxu0 }
 0x388   : > { %v1734_v39 = vadd.f32 %v1984_v31, %v1733_v54 }
 0x38a   : > { %1773 = vst.msk [vmem:[%s2974_s23 + $0x20] sm:$0xff] %vm422_vm1, %v1734_v39 }
 0x38f   : > { %v1736_v37 = vpop.f32.mrf.mxu0 }
 0x390   : > { %v1737_v57 = vadd.f32 %v1984_v31, %v1736_v37 }
 0x392   : > { %1774 = vst.msk [vmem:[%s2974_s23 + $0x28] sm:$0xff] %vm422_vm1, %v1737_v57 }
 0x397   : > { %v1739_v42 = vpop.f32.mrf.mxu0 }
 0x398   : > { %v1740_v12 = vadd.f32 %v1984_v31, %v1739_v42 }
 0x39a   : > { %1775 = vst.msk [vmem:[%s2974_s23 + $0x30] sm:$0xff] %vm422_vm1, %v1740_v12 }
 0x39f   : > { %v1742_v21 = vpop.f32.mrf.mxu0 }
 0x3a0   : > { %v1743_v58 = vadd.f32 %v1984_v31, %v1742_v21 }
 0x3a2   : > { %1776 = vst.msk [vmem:[%s2974_s23 + $0x38] sm:$0xff] %vm422_vm1, %v1743_v58 }
 0x3a7   : > { %v1745_v17 = vpop.f32.mrf.mxu0 }
 0x3a8   : > { %v1746_v59 = vadd.f32 %v1984_v31, %v1745_v17 }
 0x3aa   : > { %1777 = vst.msk [vmem:[%s2974_s23 + $0x40] sm:$0xff] %vm422_vm1, %v1746_v59 }
 0x3b0   : > { %v1748_v51 = vpop.f32.mrf.mxu0 }
 0x3b1   : > { %v1749_v0 = vadd.f32 %v1984_v31, %v1748_v51 }
 0x3b3   : > { %1778 = vst.msk [vmem:[%s2974_s23 + $0x48] sm:$0xff] %vm422_vm1, %v1749_v0 }
 0x3b8   : > { %v1751_v55 = vpop.f32.mrf.mxu0 }
 0x3b9   : > { %v1752_v7 = vadd.f32 %v1984_v31, %v1751_v55 }
 0x3bb   : > { %1779 = vst.msk [vmem:[%s2974_s23 + $0x50] sm:$0xff] %vm422_vm1, %v1752_v7 }
 0x3c0   : > { %v1754_v41 = vpop.f32.mrf.mxu3 }
 0x3c1   : > { %v1755_v3 = vadd.f32 %v1984_v31, %v1754_v41 }
 0x3c3   : > { %1780 = vst.msk [vmem:[%s2974_s23 + $0x58] sm:$0xff] %vm422_vm1, %v1755_v3 }
 0x3c8   : > { %v1757_v45 = vpop.f32.mrf.mxu3 }
 0x3c9   : > { %v1758_v29 = vadd.f32 %v1984_v31, %v1757_v45 }
 0x3cb   : > { %1781 = vst.msk [vmem:[%s2974_s23 + $0x60] sm:$0xff] %vm422_vm1, %v1758_v29 }
 0x3d1   : > { %v1760_v33 = vpop.f32.mrf.mxu3 }
 0x3d2   : > { %v1761_v5 = vadd.f32 %v1984_v31, %v1760_v33 }
 0x3d4   : > { %1782 = vst.msk [vmem:[%s2974_s23 + $0x68] sm:$0xff] %vm422_vm1, %v1761_v5 }
 0x3e0   : > { %v1763_v36 = vpop.f32.mrf.mxu3 }
 0x3e1   : > { %v1764_v8 = vadd.f32 %v1984_v31, %v1763_v36 }
 0x3e3   : > { %1783 = vst.msk [vmem:[%s2974_s23 + $0x70] sm:$0xff] %vm422_vm1, %v1764_v8 }
 0x3e9   : > { %v1766_v28 = vpop.f32.mrf.mxu3 }
 0x3ea   : > { %v1767_v11 = vadd.f32 %v1984_v31, %v1766_v28 }
 0x3ec   : > { %1784 = vst.msk [vmem:[%s2974_s23 + $0x78] sm:$0xff] %vm422_vm1, %v1767_v11 }
 0x3ed PF: > { %s12_s9 = sadd.s32 1, %s2103_s9  }
 0x3ee   : > { %p9_p4 = scmp.ge.s32.totalorder %s12_s9, 4  }
 0x3f0   :  { %11 = sbr.rel (!%p9_p4) target bundleno = 1 (0x1), region = 58 }

</bundles_post_ra>
